<compile_context>
chip_gen: v7x
topology: tpu7x:2x2x1
jax: 0.10.0
libtpu: 0.0.40
codegen_flags: <defaults>
</compile_context>

<pallas_src>
from functools import partial

import numpy as np
import jax
import jax.numpy as jnp
from jax.experimental import pallas as pl
from jax.experimental.pallas import tpu as pltpu


# --------------------------- per-head attention ----------------------------- #

def _mha_into(q, kv, o_ref, neg_mask, num_heads, head_dim):
    """q: (n, C) bf16, kv: (Nk_pad, 2C) bf16; writes (n, C) bf16 into o_ref."""
    C = num_heads * head_dim
    for h in range(num_heads):
        lo = h * head_dim
        hi = lo + head_dim
        q_h = q[:, lo:hi]                                     # (n, d) bf16
        k_h = kv[:, lo:hi]                                    # (Nk_pad, d) bf16
        v_h = kv[:, C + lo:C + hi]                            # (Nk_pad, d) bf16
        s = jax.lax.dot_general(q_h, k_h, (((1,), (1,)), ((), ())),
                                preferred_element_type=jnp.float32)
        if neg_mask is not None:
            s = s + neg_mask                                  # kill padded kv cols
        m = jnp.max(s, axis=-1, keepdims=True)
        e = jnp.exp(s - m)
        d = jnp.sum(e, axis=-1, keepdims=True)
        o_h = jnp.dot(e.astype(jnp.bfloat16), v_h,
                      preferred_element_type=jnp.float32)
        o_h = o_h * pl.reciprocal(d, approx=True)             # normalize (n,d), EUP
        o_ref[:, lo:hi] = o_h.astype(jnp.bfloat16)


# ------------------------------ fused kernel -------------------------------- #

def _fused_sra_attention_kernel(*refs, num_heads, head_dim, gt_num,
                                n_main, nk, nk_pad, use_sr):
    if use_sr:
        (gt_ref, x_ref, p_ref,
         q_w_ref, q_b_ref, kv_w_ref, kv_b_ref,
         sr_w_ref, sr_b_ref, ln_g_ref, ln_b_ref,
         proj_w_ref, proj_b_ref,
         out_x_ref, out_gt_ref,
         kv_scr, ox_scr, ogt_scr) = refs
    else:
        (gt_ref, x_ref,
         q_w_ref, q_b_ref, kv_w_ref, kv_b_ref,
         proj_w_ref, proj_b_ref,
         out_x_ref, out_gt_ref,
         kv_scr, ox_scr, ogt_scr) = refs

    C = num_heads * head_dim
    bf = jnp.bfloat16
    qt = pl.program_id(1)

    x_tile = x_ref[0].astype(bf)                              # (tq, C)
    gt_tok = gt_ref[0]                                        # (gt_num, C) bf16
    q_w = q_w_ref[...]                                        # scale pre-folded
    q_b = q_b_ref[...]
    kv_w = kv_w_ref[...]
    kv_b = kv_b_ref[...]
    proj_w = proj_w_ref[...]
    proj_b = proj_b_ref[...]

    # Mask for padded kv rows (softmax must ignore them).
    if nk_pad > nk:
        col = jax.lax.broadcasted_iota(jnp.int32, (1, nk_pad), 1)
        neg_mask = jnp.where(col < nk, 0.0, -1e30).astype(jnp.float32)
    else:
        neg_mask = None

    # ---- once per batch element: build the merged kv buffer + gt output ---- #
    @pl.when(qt == 0)
    def _build_kv_and_gt_out():
        kv_scr[...] = jnp.zeros_like(kv_scr)                  # finite pad rows

        if use_sr:
            # sr Conv2d(k=sr, stride=sr) == patch-merge matmul; LayerNorm in f32.
            xp = p_ref[0]                                     # (n_main, sr*sr*C) bf16
            xs = jnp.dot(xp, sr_w_ref[...],
                         preferred_element_type=jnp.float32) + sr_b_ref[...]
            mu = jnp.mean(xs, axis=-1, keepdims=True)
            var = jnp.mean((xs - mu) ** 2, axis=-1, keepdims=True)
            xs = (xs - mu) * jax.lax.rsqrt(var + 1e-5)
            xs = xs * ln_g_ref[...] + ln_b_ref[...]
            main_tok = xs.astype(bf)                          # (n_main, C)
        else:
            main_tok = x_tile                                 # full x (n_qt == 1)

        # kv projection, stored bf16 once.  Row order [reduced tokens ; gt]
        # differs from torch but softmax over kv tokens is permutation-invariant.
        kv_main = jnp.dot(main_tok, kv_w,
                          preferred_element_type=jnp.float32) + kv_b
        kv_scr[0:n_main, :] = kv_main.astype(bf)
        kv_gt = jnp.dot(gt_tok, kv_w,
                        preferred_element_type=jnp.float32) + kv_b
        kv_scr[n_main:n_main + gt_num, :] = kv_gt.astype(bf)

        # gt queries (tiny block, once per batch element)
        q_gt = (jnp.dot(gt_tok, q_w, preferred_element_type=jnp.float32)
                + q_b).astype(bf)
        _mha_into(q_gt, kv_scr[...], ogt_scr, neg_mask, num_heads, head_dim)
        og = jnp.dot(ogt_scr[...], proj_w,
                     preferred_element_type=jnp.float32) + proj_b
        out_gt_ref[0] = og.astype(out_gt_ref.dtype)

    # ---- every step: this query tile ---------------------------------------- #
    q_x = (jnp.dot(x_tile, q_w, preferred_element_type=jnp.float32)
           + q_b).astype(bf)
    _mha_into(q_x, kv_scr[...], ox_scr, neg_mask, num_heads, head_dim)
    ox = jnp.dot(ox_scr[...], proj_w,
                 preferred_element_type=jnp.float32) + proj_b
    out_x_ref[0] = ox.astype(out_x_ref.dtype)


# ----------------------------- forward wrapper ------------------------------ #

def _pick_q_tile(n, max_tile):
    if n <= max_tile:
        return n
    for t in range(min(max_tile, n), 7, -1):
        if n % t == 0 and t % 8 == 0:
            return t
    return n


def attention_forward(x, H, W, gt, params, *, num_heads, sr_ratio, gt_num,
                      max_q_tile=256):
    B, N_, C = x.shape
    assert N_ == H * W
    assert gt_num >= 1, "gt_num == 0 path not specialized"
    head_dim = C // num_heads
    scale = head_dim ** -0.5
    use_sr = sr_ratio > 1

    if gt.ndim != 3:
        gt = jnp.broadcast_to(gt[None, :, :], (B,) + gt.shape)
    gt_b = gt.astype(jnp.bfloat16)

    # Query tiling (qt grid axis).  sr==1 needs the full token set for kv.
    tq = _pick_q_tile(N_, max_q_tile) if use_sr else N_
    n_qt = N_ // tq
    assert N_ % tq == 0

    # kv geometry
    if use_sr:
        Hs, Ws = H // sr_ratio, W // sr_ratio
        n_main = Hs * Ws
    else:
        n_main = N_
    Nk = n_main + gt_num
    Nk_pad = ((Nk + 15) // 16) * 16

    bf16 = lambda a: a.astype(jnp.bfloat16)
    row = lambda v: v.reshape(1, -1).astype(jnp.float32)

    # fold softmax scale into the q projection
    q_w = bf16(params["q_w"] * scale)
    q_b = row(params["q_b"] * scale)

    inputs = [gt_b, x]
    in_specs = [
        pl.BlockSpec((1, gt_num, C), lambda b, t: (b, 0, 0)),
        pl.BlockSpec((1, tq, C), lambda b, t: (b, t, 0)),
    ]
    if use_sr:
        patches = x.reshape(B, Hs, sr_ratio, Ws, sr_ratio, C)
        patches = patches.transpose(0, 1, 3, 2, 4, 5).reshape(
            B, n_main, sr_ratio * sr_ratio * C)
        inputs.append(bf16(patches))
        in_specs.append(pl.BlockSpec((1, n_main, sr_ratio * sr_ratio * C),
                                     lambda b, t: (b, 0, 0)))

    def add_param(a):
        inputs.append(a)
        in_specs.append(pl.BlockSpec(a.shape, lambda b, t, nd=a.ndim: (0,) * nd))

    add_param(q_w)
    add_param(q_b)
    add_param(bf16(params["kv_w"]))
    add_param(row(params["kv_b"]))
    if use_sr:
        add_param(bf16(params["sr_w"]))
        add_param(row(params["sr_b"]))
        add_param(row(params["norm_g"]))
        add_param(row(params["norm_b"]))
    add_param(bf16(params["proj_w"]))
    add_param(row(params["proj_b"]))

    kernel = partial(_fused_sra_attention_kernel,
                     num_heads=num_heads, head_dim=head_dim, gt_num=gt_num,
                     n_main=n_main, nk=Nk, nk_pad=Nk_pad, use_sr=use_sr)

    out_x, out_gt = pl.pallas_call(
        kernel,
        out_shape=(jax.ShapeDtypeStruct((B, N_, C), x.dtype),
                   jax.ShapeDtypeStruct((B, gt_num, C), x.dtype)),
        grid=(B, n_qt),
        in_specs=in_specs,
        out_specs=(pl.BlockSpec((1, tq, C), lambda b, t: (b, t, 0)),
                   pl.BlockSpec((1, gt_num, C), lambda b, t: (b, 0, 0))),
        scratch_shapes=[
            pltpu.VMEM((Nk_pad, 2 * C), jnp.bfloat16),   # merged bf16 kv cache
            pltpu.VMEM((tq, C), jnp.bfloat16),           # per-tile head outputs
            pltpu.VMEM((gt_num, C), jnp.bfloat16),       # gt head outputs
        ],
        compiler_params=pltpu.CompilerParams(
            dimension_semantics=("parallel", "arbitrary"),
            vmem_limit_bytes=48 * 1024 * 1024),
    )(*inputs)
    return out_x, out_gt


# ----------------------------- pure-JAX reference --------------------------- #

def ref_forward(x, H, W, gt, params, *, num_heads, sr_ratio, gt_num):
    B, N_, C = x.shape
    if gt.ndim != 3:
        gt = jnp.broadcast_to(gt[None, :, :], (B,) + gt.shape)
    x = jnp.concatenate([gt, x], axis=1)
    B, N, C = x.shape
    head_dim = C // num_heads
    scale = head_dim ** -0.5

    q = x.reshape(B * N, C) @ params["q_w"] + params["q_b"]
    q = q.reshape(B, N, num_heads, head_dim).transpose(0, 2, 1, 3)

    if sr_ratio > 1:
        x_tok = x[:, gt_num:, :] if gt_num != 0 else x
        Hs, Ws = H // sr_ratio, W // sr_ratio
        patches = x_tok.reshape(B, Hs, sr_ratio, Ws, sr_ratio, C)
        patches = patches.transpose(0, 1, 3, 2, 4, 5).reshape(
            B * Hs * Ws, sr_ratio * sr_ratio * C)
        x_sr = patches @ params["sr_w"] + params["sr_b"]
        mean = jnp.mean(x_sr, axis=-1, keepdims=True)
        var = jnp.mean((x_sr - mean) ** 2, axis=-1, keepdims=True)
        x_sr = (x_sr - mean) * jax.lax.rsqrt(var + 1e-5)
        x_sr = x_sr * params["norm_g"] + params["norm_b"]
        x_sr = x_sr.reshape(B, Hs * Ws, C)
        x_kv = jnp.concatenate([gt, x_sr], axis=1) if gt_num != 0 else x_sr
    else:
        x_kv = x

    Nk = x_kv.shape[1]
    kv = x_kv.reshape(B * Nk, C) @ params["kv_w"] + params["kv_b"]
    kv = kv.reshape(B, Nk, 2, num_heads, head_dim).transpose(2, 0, 3, 1, 4)
    k, v = kv[0], kv[1]

    attn = jnp.einsum("bhnd,bhkd->bhnk", q, k) * scale
    attn = jax.nn.softmax(attn, axis=-1)
    out = jnp.einsum("bhnk,bhkd->bhnd", attn, v)
    out = out.transpose(0, 2, 1, 3).reshape(B, N, C)
    out = out.reshape(B * N, C) @ params["proj_w"] + params["proj_b"]
    out = out.reshape(B, N, C)
    return out[:, gt_num:, :], out[:, :gt_num, :]


# ---------------------------------- main ------------------------------------ #

if __name__ == "__main__":
    B, C = 2, 32
    num_heads, gt_num = 2, 1
    sr_max = 2

    key = jax.random.PRNGKey(0)
    ks = jax.random.split(key, 12)

    def init(k, shape):
        return (0.02 * jax.random.normal(k, shape)).astype(jnp.float32)

    params = {
        "q_w": init(ks[0], (C, C)),
        "q_b": init(ks[1], (C,)),
        "kv_w": init(ks[2], (C, 2 * C)),
        "kv_b": init(ks[3], (2 * C,)),
        # sr Conv2d(C, C, kernel=sr, stride=sr) flattened to a patch matmul,
        # row order (i, j, c_in).  NOTE: importing real PyTorch conv weights
        # (o, c, i, j) requires permuting to ((i, j, c), o).
        "sr_w": init(ks[4], (sr_max * sr_max * C, C)),
        "sr_b": init(ks[5], (C,)),
        "norm_g": jnp.ones((C,), jnp.float32),
        "norm_b": jnp.zeros((C,), jnp.float32),
        "proj_w": init(ks[6], (C, C)),
        "proj_b": init(ks[7], (C,)),
    }

    gt = jax.random.normal(ks[11], (gt_num, C), jnp.float32)

    # bf16 MXU operands + approx reciprocal => relaxed tolerance vs f32 reference.
    RTOL, ATOL = 2e-2, 3e-3

    # (H, W, sr_ratio, max_q_tile); the (16,16,2,128) config exercises n_qt = 2.
    configs = [
        (8, 8, 2, 256),
        (8, 8, 1, 256),
        (16, 16, 2, 128),
        (16, 16, 1, 256),
    ]

    for idx, (H, W, sr_ratio, max_q_tile) in enumerate(configs):
        N_ = H * W
        x = jax.random.normal(jax.random.fold_in(ks[10], idx),
                              (B, N_, C), jnp.float32)

        out_x, out_gt = attention_forward(
            x, H, W, gt, params,
            num_heads=num_heads, sr_ratio=sr_ratio, gt_num=gt_num,
            max_q_tile=max_q_tile)
        jax.block_until_ready((out_x, out_gt))

        ref_x, ref_gt = ref_forward(
            x, H, W, gt, params,
            num_heads=num_heads, sr_ratio=sr_ratio, gt_num=gt_num)

        assert out_x.shape == (B, N_, C) and out_gt.shape == (B, gt_num, C)
        assert np.allclose(np.asarray(out_x), np.asarray(ref_x),
                           rtol=RTOL, atol=ATOL), \
            f"x mismatch (H={H}, W={W}, sr={sr_ratio})"
        assert np.allclose(np.asarray(out_gt), np.asarray(ref_gt),
                           rtol=RTOL, atol=ATOL), \
            f"gt mismatch (H={H}, W={W}, sr={sr_ratio})"

    print("KERNEL_OK")
</pallas_src>

<mosaic_0001>
module attributes {stable_mosaic.version = 11 : i64} {
  func.func @_fused_sra_attention_kernel(%arg0: i32, %arg1: i32, %arg2: memref<1x1x32xbf16, #tpu.memory_space<vmem>>, %arg3: memref<1x64x32xf32, #tpu.memory_space<vmem>>, %arg4: memref<1x16x128xbf16, #tpu.memory_space<vmem>>, %arg5: memref<32x32xbf16, #tpu.memory_space<vmem>>, %arg6: memref<1x32xf32, #tpu.memory_space<vmem>>, %arg7: memref<32x64xbf16, #tpu.memory_space<vmem>>, %arg8: memref<1x64xf32, #tpu.memory_space<vmem>>, %arg9: memref<128x32xbf16, #tpu.memory_space<vmem>>, %arg10: memref<1x32xf32, #tpu.memory_space<vmem>>, %arg11: memref<1x32xf32, #tpu.memory_space<vmem>>, %arg12: memref<1x32xf32, #tpu.memory_space<vmem>>, %arg13: memref<32x32xbf16, #tpu.memory_space<vmem>>, %arg14: memref<1x32xf32, #tpu.memory_space<vmem>>, %arg15: memref<1x64x32xf32, #tpu.memory_space<vmem>>, %arg16: memref<1x1x32xf32, #tpu.memory_space<vmem>>, %arg17: memref<32x64xbf16, #tpu.memory_space<vmem>>, %arg18: memref<64x32xbf16, #tpu.memory_space<vmem>>, %arg19: memref<1x32xbf16, #tpu.memory_space<vmem>>) attributes {dimension_semantics = [#tpu.dimension_semantics<parallel>, #tpu.dimension_semantics<arbitrary>], iteration_bounds = array<i64: 2, 1>, scalar_prefetch = 0 : i64, scratch_operands = 3 : i64, tpu.core_type = #tpu.core_type<tc>, window_params = [{transform_indices = @transform_0, window_bounds = array<i64: 1, 1, 32>}, {transform_indices = @transform_1, window_bounds = array<i64: 1, 64, 32>}, {transform_indices = @transform_2, window_bounds = array<i64: 1, 16, 128>}, {pipeline_mode = #tpu.pipeline_mode<synchronous>, transform_indices = @transform_3, window_bounds = array<i64: 32, 32>}, {pipeline_mode = #tpu.pipeline_mode<synchronous>, transform_indices = @transform_4, window_bounds = array<i64: 1, 32>}, {pipeline_mode = #tpu.pipeline_mode<synchronous>, transform_indices = @transform_5, window_bounds = array<i64: 32, 64>}, {pipeline_mode = #tpu.pipeline_mode<synchronous>, transform_indices = @transform_6, window_bounds = array<i64: 1, 64>}, {pipeline_mode = #tpu.pipeline_mode<synchronous>, transform_indices = @transform_7, window_bounds = array<i64: 128, 32>}, {pipeline_mode = #tpu.pipeline_mode<synchronous>, transform_indices = @transform_8, window_bounds = array<i64: 1, 32>}, {pipeline_mode = #tpu.pipeline_mode<synchronous>, transform_indices = @transform_9, window_bounds = array<i64: 1, 32>}, {pipeline_mode = #tpu.pipeline_mode<synchronous>, transform_indices = @transform_10, window_bounds = array<i64: 1, 32>}, {pipeline_mode = #tpu.pipeline_mode<synchronous>, transform_indices = @transform_11, window_bounds = array<i64: 32, 32>}, {pipeline_mode = #tpu.pipeline_mode<synchronous>, transform_indices = @transform_12, window_bounds = array<i64: 1, 32>}, {transform_indices = @transform_13, window_bounds = array<i64: 1, 64, 32>}, {transform_indices = @transform_14, window_bounds = array<i64: 1, 1, 32>}]} {
    %c0 = arith.constant 0 : index
    %c0_0 = arith.constant 0 : index
    %c0_1 = arith.constant 0 : index
    %0 = vector.load %arg3[%c0, %c0_0, %c0_1] : memref<1x64x32xf32, #tpu.memory_space<vmem>>, vector<1x64x32xf32>
    %1 = vector.shape_cast %0 : vector<1x64x32xf32> to vector<64x32xf32>
    %2 = arith.truncf %1 : vector<64x32xf32> to vector<64x32xbf16>
    %c0_2 = arith.constant 0 : index
    %c0_3 = arith.constant 0 : index
    %c0_4 = arith.constant 0 : index
    %3 = vector.load %arg2[%c0_2, %c0_3, %c0_4] : memref<1x1x32xbf16, #tpu.memory_space<vmem>>, vector<1x1x32xbf16>
    %4 = vector.shape_cast %3 : vector<1x1x32xbf16> to vector<1x32xbf16>
    %c0_5 = arith.constant 0 : index
    %c0_6 = arith.constant 0 : index
    %5 = vector.load %arg5[%c0_5, %c0_6] : memref<32x32xbf16, #tpu.memory_space<vmem>>, vector<32x32xbf16>
    %c0_7 = arith.constant 0 : index
    %c0_8 = arith.constant 0 : index
    %6 = vector.load %arg6[%c0_7, %c0_8] : memref<1x32xf32, #tpu.memory_space<vmem>>, vector<1x32xf32>
    %c0_9 = arith.constant 0 : index
    %c0_10 = arith.constant 0 : index
    %7 = vector.load %arg7[%c0_9, %c0_10] : memref<32x64xbf16, #tpu.memory_space<vmem>>, vector<32x64xbf16>
    %c0_11 = arith.constant 0 : index
    %c0_12 = arith.constant 0 : index
    %8 = vector.load %arg8[%c0_11, %c0_12] : memref<1x64xf32, #tpu.memory_space<vmem>>, vector<1x64xf32>
    %c0_13 = arith.constant 0 : index
    %c0_14 = arith.constant 0 : index
    %9 = vector.load %arg13[%c0_13, %c0_14] : memref<32x32xbf16, #tpu.memory_space<vmem>>, vector<32x32xbf16>
    %c0_15 = arith.constant 0 : index
    %c0_16 = arith.constant 0 : index
    %10 = vector.load %arg14[%c0_15, %c0_16] : memref<1x32xf32, #tpu.memory_space<vmem>>, vector<1x32xf32>
    %11 = tpu.iota {dimensions = array<i32: 1>} : vector<1x32xi32>
    %c17_i32 = arith.constant 17 : i32
    %12 = vector.broadcast %c17_i32 : i32 to vector<1x32xi32>
    %13 = arith.cmpi slt, %11, %12 : vector<1x32xi32>
    %cst = arith.constant 0.000000e+00 : f32
    %cst_17 = arith.constant -1.000000e+30 : f32
    %14 = vector.broadcast %cst : f32 to vector<1x32xf32>
    %15 = vector.broadcast %cst_17 : f32 to vector<1x32xf32>
    %16 = arith.select %13, %14, %15 : vector<1x32xi1>, vector<1x32xf32>
    %c0_i32 = arith.constant 0 : i32
    %17 = arith.cmpi eq, %arg1, %c0_i32 : i32
    %18 = arith.extui %17 : i1 to i32
    %c0_i32_18 = arith.constant 0 : i32
    %19 = arith.cmpi ne, %18, %c0_i32_18 : i32
    scf.if %19 {
      %cst_39 = arith.constant 0.000000e+00 : bf16
      %72 = vector.broadcast %cst_39 : bf16 to vector<32x64xbf16>
      %c0_40 = arith.constant 0 : index
      %c0_41 = arith.constant 0 : index
      %73 = vector.load %arg17[%c0_40, %c0_41] : memref<32x64xbf16, #tpu.memory_space<vmem>>, vector<32x64xbf16>
      tpu.vector_store %arg17[%c0_40, %c0_41], %72 {strides = array<i32>} : memref<32x64xbf16, #tpu.memory_space<vmem>>, vector<32x64xbf16>,
      %c0_42 = arith.constant 0 : index
      %c0_43 = arith.constant 0 : index
      %c0_44 = arith.constant 0 : index
      %74 = vector.load %arg4[%c0_42, %c0_43, %c0_44] : memref<1x16x128xbf16, #tpu.memory_space<vmem>>, vector<1x16x128xbf16>
      %75 = vector.shape_cast %74 : vector<1x16x128xbf16> to vector<16x128xbf16>
      %c0_45 = arith.constant 0 : index
      %c0_46 = arith.constant 0 : index
      %76 = vector.load %arg9[%c0_45, %c0_46] : memref<128x32xbf16, #tpu.memory_space<vmem>>, vector<128x32xbf16>
      %cst_47 = arith.constant dense<0.000000e+00> : vector<16x32xf32>
      %77 = tpu.matmul %75, %76, %cst_47 {dimension_numbers = #tpu.dot_dimension_numbers<[1], [0], [0], [1], [0, 0, 1, 1], [], []>} : vector<16x128xbf16>, vector<128x32xbf16>, vector<16x32xf32> -> vector<16x32xf32>
      %c0_48 = arith.constant 0 : index
      %c0_49 = arith.constant 0 : index
      %78 = vector.load %arg10[%c0_48, %c0_49] : memref<1x32xf32, #tpu.memory_space<vmem>>, vector<1x32xf32>
      %79 = vector.broadcast %78 : vector<1x32xf32> to vector<16x32xf32>
      %80 = arith.addf %77, %79 : vector<16x32xf32>
      %cst_50 = arith.constant dense<0.000000e+00> : vector<16xf32>
      %81 = vector.multi_reduction <add>, %80, %cst_50 [1] : vector<16x32xf32> to vector<16xf32>
      %82 = vector.shape_cast %81 : vector<16xf32> to vector<16x1xf32>
      %cst_51 = arith.constant 3.200000e+01 : f32
      %83 = vector.broadcast %cst_51 : f32 to vector<16x1xf32>
      %84 = arith.divf %82, %83 : vector<16x1xf32>
      %85 = vector.broadcast %84 : vector<16x1xf32> to vector<16x32xf32>
      %86 = arith.subf %80, %85 : vector<16x32xf32>
      %87 = arith.mulf %86, %86 : vector<16x32xf32>
      %cst_52 = arith.constant dense<0.000000e+00> : vector<16xf32>
      %88 = vector.multi_reduction <add>, %87, %cst_52 [1] : vector<16x32xf32> to vector<16xf32>
      %89 = vector.shape_cast %88 : vector<16xf32> to vector<16x1xf32>
      %cst_53 = arith.constant 3.200000e+01 : f32
      %90 = vector.broadcast %cst_53 : f32 to vector<16x1xf32>
      %91 = arith.divf %89, %90 : vector<16x1xf32>
      %92 = vector.broadcast %84 : vector<16x1xf32> to vector<16x32xf32>
      %93 = arith.subf %80, %92 : vector<16x32xf32>
      %cst_54 = arith.constant 9.99999974E-6 : f32
      %94 = vector.broadcast %cst_54 : f32 to vector<16x1xf32>
      %95 = arith.addf %91, %94 : vector<16x1xf32>
      %96 = math.rsqrt %95 : vector<16x1xf32>
      %97 = vector.broadcast %96 : vector<16x1xf32> to vector<16x32xf32>
      %98 = arith.mulf %93, %97 : vector<16x32xf32>
      %c0_55 = arith.constant 0 : index
      %c0_56 = arith.constant 0 : index
      %99 = vector.load %arg11[%c0_55, %c0_56] : memref<1x32xf32, #tpu.memory_space<vmem>>, vector<1x32xf32>
      %100 = vector.broadcast %99 : vector<1x32xf32> to vector<16x32xf32>
      %101 = arith.mulf %98, %100 : vector<16x32xf32>
      %c0_57 = arith.constant 0 : index
      %c0_58 = arith.constant 0 : index
      %102 = vector.load %arg12[%c0_57, %c0_58] : memref<1x32xf32, #tpu.memory_space<vmem>>, vector<1x32xf32>
      %103 = vector.broadcast %102 : vector<1x32xf32> to vector<16x32xf32>
      %104 = arith.addf %101, %103 : vector<16x32xf32>
      %105 = arith.truncf %104 : vector<16x32xf32> to vector<16x32xbf16>
      %cst_59 = arith.constant dense<0.000000e+00> : vector<16x64xf32>
      %106 = tpu.matmul %105, %7, %cst_59 {dimension_numbers = #tpu.dot_dimension_numbers<[1], [0], [0], [1], [0, 0, 1, 1], [], []>} : vector<16x32xbf16>, vector<32x64xbf16>, vector<16x64xf32> -> vector<16x64xf32>
      %107 = vector.broadcast %8 : vector<1x64xf32> to vector<16x64xf32>
      %108 = arith.addf %106, %107 : vector<16x64xf32>
      %109 = arith.truncf %108 : vector<16x64xf32> to vector<16x64xbf16>
      %c0_60 = arith.constant 0 : index
      %c0_61 = arith.constant 0 : index
      %110 = vector.load %arg17[%c0_60, %c0_61] : memref<32x64xbf16, #tpu.memory_space<vmem>>, vector<16x64xbf16>
      tpu.vector_store %arg17[%c0_60, %c0_61], %109 {strides = array<i32>} : memref<32x64xbf16, #tpu.memory_space<vmem>>, vector<16x64xbf16>,
      %cst_62 = arith.constant dense<0.000000e+00> : vector<1x64xf32>
      %111 = tpu.matmul %4, %7, %cst_62 {dimension_numbers = #tpu.dot_dimension_numbers<[1], [0], [0], [1], [0, 0, 1, 1], [], []>} : vector<1x32xbf16>, vector<32x64xbf16>, vector<1x64xf32> -> vector<1x64xf32>
      %112 = arith.addf %111, %8 : vector<1x64xf32>
      %113 = arith.truncf %112 : vector<1x64xf32> to vector<1x64xbf16>
      %c16_63 = arith.constant 16 : index
      %c0_64 = arith.constant 0 : index
      %114 = vector.load %arg17[%c16_63, %c0_64] : memref<32x64xbf16, #tpu.memory_space<vmem>>, vector<1x64xbf16>
      tpu.vector_store %arg17[%c16_63, %c0_64], %113 {strides = array<i32>} : memref<32x64xbf16, #tpu.memory_space<vmem>>, vector<1x64xbf16>,
      %cst_65 = arith.constant dense<0.000000e+00> : vector<1x32xf32>
      %115 = tpu.matmul %4, %5, %cst_65 {dimension_numbers = #tpu.dot_dimension_numbers<[1], [0], [0], [1], [0, 0, 1, 1], [], []>} : vector<1x32xbf16>, vector<32x32xbf16>, vector<1x32xf32> -> vector<1x32xf32>
      %116 = arith.addf %115, %6 : vector<1x32xf32>
      %117 = arith.truncf %116 : vector<1x32xf32> to vector<1x32xbf16>
      %c0_66 = arith.constant 0 : index
      %c0_67 = arith.constant 0 : index
      %118 = vector.load %arg17[%c0_66, %c0_67] : memref<32x64xbf16, #tpu.memory_space<vmem>>, vector<32x64xbf16>
      %119 = vector.extract_strided_slice %117 {offsets = [0, 0], sizes = [1, 16], strides = [1, 1]} : vector<1x32xbf16> to vector<1x16xbf16>
      %120 = vector.extract_strided_slice %118 {offsets = [0, 0], sizes = [32, 16], strides = [1, 1]} : vector<32x64xbf16> to vector<32x16xbf16>
      %121 = vector.extract_strided_slice %118 {offsets = [0, 32], sizes = [32, 16], strides = [1, 1]} : vector<32x64xbf16> to vector<32x16xbf16>
      %cst_68 = arith.constant dense<0.000000e+00> : vector<1x32xf32>
      %122 = tpu.matmul %119, %120, %cst_68 {dimension_numbers = #tpu.dot_dimension_numbers<[1], [1], [0], [0], [0, 0, 1, 0], [], []>} : vector<1x16xbf16>, vector<32x16xbf16>, vector<1x32xf32> -> vector<1x32xf32>
      %123 = arith.addf %122, %16 : vector<1x32xf32>
      %cst_69 = arith.constant dense<0xFF800000> : vector<1xf32>
      %124 = vector.multi_reduction <maximumf>, %123, %cst_69 [1] : vector<1x32xf32> to vector<1xf32>
      %125 = vector.shape_cast %124 : vector<1xf32> to vector<1x1xf32>
      %126 = vector.broadcast %125 : vector<1x1xf32> to vector<1x32xf32>
      %127 = arith.subf %123, %126 : vector<1x32xf32>
      %128 = math.exp %127 : vector<1x32xf32>
      %cst_70 = arith.constant dense<0.000000e+00> : vector<1xf32>
      %129 = vector.multi_reduction <add>, %128, %cst_70 [1] : vector<1x32xf32> to vector<1xf32>
      %130 = vector.shape_cast %129 : vector<1xf32> to vector<1x1xf32>
      %131 = arith.truncf %128 : vector<1x32xf32> to vector<1x32xbf16>
      %cst_71 = arith.constant dense<0.000000e+00> : vector<1x16xf32>
      %132 = tpu.matmul %131, %121, %cst_71 {dimension_numbers = #tpu.dot_dimension_numbers<[1], [0], [0], [1], [0, 0, 1, 1], [], []>} : vector<1x32xbf16>, vector<32x16xbf16>, vector<1x16xf32> -> vector<1x16xf32>
      %133 = tpu.reciprocal %130 {approx = true} : vector<1x1xf32> -> vector<1x1xf32>
      %134 = vector.broadcast %133 : vector<1x1xf32> to vector<1x16xf32>
      %135 = arith.mulf %132, %134 : vector<1x16xf32>
      %136 = arith.truncf %135 : vector<1x16xf32> to vector<1x16xbf16>
      %c0_72 = arith.constant 0 : index
      %c0_73 = arith.constant 0 : index
      %137 = vector.load %arg19[%c0_72, %c0_73] : memref<1x32xbf16, #tpu.memory_space<vmem>>, vector<1x16xbf16>
      tpu.vector_store %arg19[%c0_72, %c0_73], %136 {strides = array<i32>} : memref<1x32xbf16, #tpu.memory_space<vmem>>, vector<1x16xbf16>,
      %138 = vector.extract_strided_slice %117 {offsets = [0, 16], sizes = [1, 16], strides = [1, 1]} : vector<1x32xbf16> to vector<1x16xbf16>
      %139 = vector.extract_strided_slice %118 {offsets = [0, 16], sizes = [32, 16], strides = [1, 1]} : vector<32x64xbf16> to vector<32x16xbf16>
      %140 = vector.extract_strided_slice %118 {offsets = [0, 48], sizes = [32, 16], strides = [1, 1]} : vector<32x64xbf16> to vector<32x16xbf16>
      %cst_74 = arith.constant dense<0.000000e+00> : vector<1x32xf32>
      %141 = tpu.matmul %138, %139, %cst_74 {dimension_numbers = #tpu.dot_dimension_numbers<[1], [1], [0], [0], [0, 0, 1, 0], [], []>} : vector<1x16xbf16>, vector<32x16xbf16>, vector<1x32xf32> -> vector<1x32xf32>
      %142 = arith.addf %141, %16 : vector<1x32xf32>
      %cst_75 = arith.constant dense<0xFF800000> : vector<1xf32>
      %143 = vector.multi_reduction <maximumf>, %142, %cst_75 [1] : vector<1x32xf32> to vector<1xf32>
      %144 = vector.shape_cast %143 : vector<1xf32> to vector<1x1xf32>
      %145 = vector.broadcast %144 : vector<1x1xf32> to vector<1x32xf32>
      %146 = arith.subf %142, %145 : vector<1x32xf32>
      %147 = math.exp %146 : vector<1x32xf32>
      %cst_76 = arith.constant dense<0.000000e+00> : vector<1xf32>
      %148 = vector.multi_reduction <add>, %147, %cst_76 [1] : vector<1x32xf32> to vector<1xf32>
      %149 = vector.shape_cast %148 : vector<1xf32> to vector<1x1xf32>
      %150 = arith.truncf %147 : vector<1x32xf32> to vector<1x32xbf16>
      %cst_77 = arith.constant dense<0.000000e+00> : vector<1x16xf32>
      %151 = tpu.matmul %150, %140, %cst_77 {dimension_numbers = #tpu.dot_dimension_numbers<[1], [0], [0], [1], [0, 0, 1, 1], [], []>} : vector<1x32xbf16>, vector<32x16xbf16>, vector<1x16xf32> -> vector<1x16xf32>
      %152 = tpu.reciprocal %149 {approx = true} : vector<1x1xf32> -> vector<1x1xf32>
      %153 = vector.broadcast %152 : vector<1x1xf32> to vector<1x16xf32>
      %154 = arith.mulf %151, %153 : vector<1x16xf32>
      %155 = arith.truncf %154 : vector<1x16xf32> to vector<1x16xbf16>
      %c0_78 = arith.constant 0 : index
      %c16_79 = arith.constant 16 : index
      %156 = vector.load %arg19[%c0_78, %c16_79] : memref<1x32xbf16, #tpu.memory_space<vmem>>, vector<1x16xbf16>
      tpu.vector_store %arg19[%c0_78, %c16_79], %155 {strides = array<i32>} : memref<1x32xbf16, #tpu.memory_space<vmem>>, vector<1x16xbf16>,
      %c0_80 = arith.constant 0 : index
      %c0_81 = arith.constant 0 : index
      %157 = vector.load %arg19[%c0_80, %c0_81] : memref<1x32xbf16, #tpu.memory_space<vmem>>, vector<1x32xbf16>
      %cst_82 = arith.constant dense<0.000000e+00> : vector<1x32xf32>
      %158 = tpu.matmul %157, %9, %cst_82 {dimension_numbers = #tpu.dot_dimension_numbers<[1], [0], [0], [1], [0, 0, 1, 1], [], []>} : vector<1x32xbf16>, vector<32x32xbf16>, vector<1x32xf32> -> vector<1x32xf32>
      %159 = arith.addf %158, %10 : vector<1x32xf32>
      %c0_83 = arith.constant 0 : index
      %c0_84 = arith.constant 0 : index
      %c0_85 = arith.constant 0 : index
      %160 = vector.load %arg16[%c0_83, %c0_84, %c0_85] : memref<1x1x32xf32, #tpu.memory_space<vmem>>, vector<1x1x32xf32>
      %161 = vector.shape_cast %160 : vector<1x1x32xf32> to vector<1x32xf32>
      %162 = vector.shape_cast %159 : vector<1x32xf32> to vector<1x1x32xf32>
      tpu.vector_store %arg16[%c0_83, %c0_84, %c0_85], %162 {strides = array<i32>} : memref<1x1x32xf32, #tpu.memory_space<vmem>>, vector<1x1x32xf32>,
    } else {
    }
    %cst_19 = arith.constant dense<0.000000e+00> : vector<64x32xf32>
    %20 = tpu.matmul %2, %5, %cst_19 {dimension_numbers = #tpu.dot_dimension_numbers<[1], [0], [0], [1], [0, 0, 1, 1], [], []>} : vector<64x32xbf16>, vector<32x32xbf16>, vector<64x32xf32> -> vector<64x32xf32>
    %21 = vector.broadcast %6 : vector<1x32xf32> to vector<64x32xf32>
    %22 = arith.addf %20, %21 : vector<64x32xf32>
    %23 = arith.truncf %22 : vector<64x32xf32> to vector<64x32xbf16>
    %c0_20 = arith.constant 0 : index
    %c0_21 = arith.constant 0 : index
    %24 = vector.load %arg17[%c0_20, %c0_21] : memref<32x64xbf16, #tpu.memory_space<vmem>>, vector<32x64xbf16>
    %25 = vector.extract_strided_slice %23 {offsets = [0, 0], sizes = [64, 16], strides = [1, 1]} : vector<64x32xbf16> to vector<64x16xbf16>
    %26 = vector.extract_strided_slice %24 {offsets = [0, 0], sizes = [32, 16], strides = [1, 1]} : vector<32x64xbf16> to vector<32x16xbf16>
    %27 = vector.extract_strided_slice %24 {offsets = [0, 32], sizes = [32, 16], strides = [1, 1]} : vector<32x64xbf16> to vector<32x16xbf16>
    %cst_22 = arith.constant dense<0.000000e+00> : vector<64x32xf32>
    %28 = tpu.matmul %25, %26, %cst_22 {dimension_numbers = #tpu.dot_dimension_numbers<[1], [1], [0], [0], [0, 0, 1, 0], [], []>} : vector<64x16xbf16>, vector<32x16xbf16>, vector<64x32xf32> -> vector<64x32xf32>
    %29 = vector.broadcast %16 : vector<1x32xf32> to vector<64x32xf32>
    %30 = arith.addf %28, %29 : vector<64x32xf32>
    %cst_23 = arith.constant dense<0xFF800000> : vector<64xf32>
    %31 = vector.multi_reduction <maximumf>, %30, %cst_23 [1] : vector<64x32xf32> to vector<64xf32>
    %32 = vector.shape_cast %31 : vector<64xf32> to vector<64x1xf32>
    %33 = vector.broadcast %32 : vector<64x1xf32> to vector<64x32xf32>
    %34 = arith.subf %30, %33 : vector<64x32xf32>
    %35 = math.exp %34 : vector<64x32xf32>
    %cst_24 = arith.constant dense<0.000000e+00> : vector<64xf32>
    %36 = vector.multi_reduction <add>, %35, %cst_24 [1] : vector<64x32xf32> to vector<64xf32>
    %37 = vector.shape_cast %36 : vector<64xf32> to vector<64x1xf32>
    %38 = arith.truncf %35 : vector<64x32xf32> to vector<64x32xbf16>
    %cst_25 = arith.constant dense<0.000000e+00> : vector<64x16xf32>
    %39 = tpu.matmul %38, %27, %cst_25 {dimension_numbers = #tpu.dot_dimension_numbers<[1], [0], [0], [1], [0, 0, 1, 1], [], []>} : vector<64x32xbf16>, vector<32x16xbf16>, vector<64x16xf32> -> vector<64x16xf32>
    %40 = tpu.reciprocal %37 {approx = true} : vector<64x1xf32> -> vector<64x1xf32>
    %41 = vector.broadcast %40 : vector<64x1xf32> to vector<64x16xf32>
    %42 = arith.mulf %39, %41 : vector<64x16xf32>
    %43 = arith.truncf %42 : vector<64x16xf32> to vector<64x16xbf16>
    %c0_26 = arith.constant 0 : index
    %c0_27 = arith.constant 0 : index
    %44 = vector.load %arg18[%c0_26, %c0_27] : memref<64x32xbf16, #tpu.memory_space<vmem>>, vector<64x16xbf16>
    tpu.vector_store %arg18[%c0_26, %c0_27], %43 {strides = array<i32>} : memref<64x32xbf16, #tpu.memory_space<vmem>>, vector<64x16xbf16>,
    %45 = vector.extract_strided_slice %23 {offsets = [0, 16], sizes = [64, 16], strides = [1, 1]} : vector<64x32xbf16> to vector<64x16xbf16>
    %46 = vector.extract_strided_slice %24 {offsets = [0, 16], sizes = [32, 16], strides = [1, 1]} : vector<32x64xbf16> to vector<32x16xbf16>
    %47 = vector.extract_strided_slice %24 {offsets = [0, 48], sizes = [32, 16], strides = [1, 1]} : vector<32x64xbf16> to vector<32x16xbf16>
    %cst_28 = arith.constant dense<0.000000e+00> : vector<64x32xf32>
    %48 = tpu.matmul %45, %46, %cst_28 {dimension_numbers = #tpu.dot_dimension_numbers<[1], [1], [0], [0], [0, 0, 1, 0], [], []>} : vector<64x16xbf16>, vector<32x16xbf16>, vector<64x32xf32> -> vector<64x32xf32>
    %49 = vector.broadcast %16 : vector<1x32xf32> to vector<64x32xf32>
    %50 = arith.addf %48, %49 : vector<64x32xf32>
    %cst_29 = arith.constant dense<0xFF800000> : vector<64xf32>
    %51 = vector.multi_reduction <maximumf>, %50, %cst_29 [1] : vector<64x32xf32> to vector<64xf32>
    %52 = vector.shape_cast %51 : vector<64xf32> to vector<64x1xf32>
    %53 = vector.broadcast %52 : vector<64x1xf32> to vector<64x32xf32>
    %54 = arith.subf %50, %53 : vector<64x32xf32>
    %55 = math.exp %54 : vector<64x32xf32>
    %cst_30 = arith.constant dense<0.000000e+00> : vector<64xf32>
    %56 = vector.multi_reduction <add>, %55, %cst_30 [1] : vector<64x32xf32> to vector<64xf32>
    %57 = vector.shape_cast %56 : vector<64xf32> to vector<64x1xf32>
    %58 = arith.truncf %55 : vector<64x32xf32> to vector<64x32xbf16>
    %cst_31 = arith.constant dense<0.000000e+00> : vector<64x16xf32>
    %59 = tpu.matmul %58, %47, %cst_31 {dimension_numbers = #tpu.dot_dimension_numbers<[1], [0], [0], [1], [0, 0, 1, 1], [], []>} : vector<64x32xbf16>, vector<32x16xbf16>, vector<64x16xf32> -> vector<64x16xf32>
    %60 = tpu.reciprocal %57 {approx = true} : vector<64x1xf32> -> vector<64x1xf32>
    %61 = vector.broadcast %60 : vector<64x1xf32> to vector<64x16xf32>
    %62 = arith.mulf %59, %61 : vector<64x16xf32>
    %63 = arith.truncf %62 : vector<64x16xf32> to vector<64x16xbf16>
    %c0_32 = arith.constant 0 : index
    %c16 = arith.constant 16 : index
    %64 = vector.load %arg18[%c0_32, %c16] : memref<64x32xbf16, #tpu.memory_space<vmem>>, vector<64x16xbf16>
    tpu.vector_store %arg18[%c0_32, %c16], %63 {strides = array<i32>} : memref<64x32xbf16, #tpu.memory_space<vmem>>, vector<64x16xbf16>,
    %c0_33 = arith.constant 0 : index
    %c0_34 = arith.constant 0 : index
    %65 = vector.load %arg18[%c0_33, %c0_34] : memref<64x32xbf16, #tpu.memory_space<vmem>>, vector<64x32xbf16>
    %cst_35 = arith.constant dense<0.000000e+00> : vector<64x32xf32>
    %66 = tpu.matmul %65, %9, %cst_35 {dimension_numbers = #tpu.dot_dimension_numbers<[1], [0], [0], [1], [0, 0, 1, 1], [], []>} : vector<64x32xbf16>, vector<32x32xbf16>, vector<64x32xf32> -> vector<64x32xf32>
    %67 = vector.broadcast %10 : vector<1x32xf32> to vector<64x32xf32>
    %68 = arith.addf %66, %67 : vector<64x32xf32>
    %c0_36 = arith.constant 0 : index
    %c0_37 = arith.constant 0 : index
    %c0_38 = arith.constant 0 : index
    %69 = vector.load %arg15[%c0_36, %c0_37, %c0_38] : memref<1x64x32xf32, #tpu.memory_space<vmem>>, vector<1x64x32xf32>
    %70 = vector.shape_cast %69 : vector<1x64x32xf32> to vector<64x32xf32>
    %71 = vector.shape_cast %68 : vector<64x32xf32> to vector<1x64x32xf32>
    tpu.vector_store %arg15[%c0_36, %c0_37, %c0_38], %71 {strides = array<i32>} : memref<1x64x32xf32, #tpu.memory_space<vmem>>, vector<1x64x32xf32>,
    return
  }
  func.func @transform_0(%arg0: i32, %arg1: i32) -> (i32, i32, i32) {
    %c0_i32 = arith.constant 0 : i32
    %c0_i32_0 = arith.constant 0 : i32
    %c0_i32_1 = arith.constant 0 : i32
    return %arg0, %c0_i32, %c0_i32_0 : i32, i32, i32
  }
  func.func @transform_1(%arg0: i32, %arg1: i32) -> (i32, i32, i32) {
    %c0_i32 = arith.constant 0 : i32
    %c0_i32_0 = arith.constant 0 : i32
    return %arg0, %arg1, %c0_i32 : i32, i32, i32
  }
  func.func @transform_2(%arg0: i32, %arg1: i32) -> (i32, i32, i32) {
    %c0_i32 = arith.constant 0 : i32
    %c0_i32_0 = arith.constant 0 : i32
    %c0_i32_1 = arith.constant 0 : i32
    return %arg0, %c0_i32, %c0_i32_0 : i32, i32, i32
  }
  func.func @transform_3(%arg0: i32, %arg1: i32) -> (i32, i32) {
    %c0_i32 = arith.constant 0 : i32
    %c0_i32_0 = arith.constant 0 : i32
    %c0_i32_1 = arith.constant 0 : i32
    return %c0_i32, %c0_i32_0 : i32, i32
  }
  func.func @transform_4(%arg0: i32, %arg1: i32) -> (i32, i32) {
    %c0_i32 = arith.constant 0 : i32
    %c0_i32_0 = arith.constant 0 : i32
    %c0_i32_1 = arith.constant 0 : i32
    return %c0_i32, %c0_i32_0 : i32, i32
  }
  func.func @transform_5(%arg0: i32, %arg1: i32) -> (i32, i32) {
    %c0_i32 = arith.constant 0 : i32
    %c0_i32_0 = arith.constant 0 : i32
    %c0_i32_1 = arith.constant 0 : i32
    return %c0_i32, %c0_i32_0 : i32, i32
  }
  func.func @transform_6(%arg0: i32, %arg1: i32) -> (i32, i32) {
    %c0_i32 = arith.constant 0 : i32
    %c0_i32_0 = arith.constant 0 : i32
    %c0_i32_1 = arith.constant 0 : i32
    return %c0_i32, %c0_i32_0 : i32, i32
  }
  func.func @transform_7(%arg0: i32, %arg1: i32) -> (i32, i32) {
    %c0_i32 = arith.constant 0 : i32
    %c0_i32_0 = arith.constant 0 : i32
    %c0_i32_1 = arith.constant 0 : i32
    return %c0_i32, %c0_i32_0 : i32, i32
  }
  func.func @transform_8(%arg0: i32, %arg1: i32) -> (i32, i32) {
    %c0_i32 = arith.constant 0 : i32
    %c0_i32_0 = arith.constant 0 : i32
    %c0_i32_1 = arith.constant 0 : i32
    return %c0_i32, %c0_i32_0 : i32, i32
  }
  func.func @transform_9(%arg0: i32, %arg1: i32) -> (i32, i32) {
    %c0_i32 = arith.constant 0 : i32
    %c0_i32_0 = arith.constant 0 : i32
    %c0_i32_1 = arith.constant 0 : i32
    return %c0_i32, %c0_i32_0 : i32, i32
  }
  func.func @transform_10(%arg0: i32, %arg1: i32) -> (i32, i32) {
    %c0_i32 = arith.constant 0 : i32
    %c0_i32_0 = arith.constant 0 : i32
    %c0_i32_1 = arith.constant 0 : i32
    return %c0_i32, %c0_i32_0 : i32, i32
  }
  func.func @transform_11(%arg0: i32, %arg1: i32) -> (i32, i32) {
    %c0_i32 = arith.constant 0 : i32
    %c0_i32_0 = arith.constant 0 : i32
    %c0_i32_1 = arith.constant 0 : i32
    return %c0_i32, %c0_i32_0 : i32, i32
  }
  func.func @transform_12(%arg0: i32, %arg1: i32) -> (i32, i32) {
    %c0_i32 = arith.constant 0 : i32
    %c0_i32_0 = arith.constant 0 : i32
    %c0_i32_1 = arith.constant 0 : i32
    return %c0_i32, %c0_i32_0 : i32, i32
  }
  func.func @transform_13(%arg0: i32, %arg1: i32) -> (i32, i32, i32) {
    %c0_i32 = arith.constant 0 : i32
    %c0_i32_0 = arith.constant 0 : i32
    return %arg0, %arg1, %c0_i32 : i32, i32, i32
  }
  func.func @transform_14(%arg0: i32, %arg1: i32) -> (i32, i32, i32) {
    %c0_i32 = arith.constant 0 : i32
    %c0_i32_0 = arith.constant 0 : i32
    %c0_i32_1 = arith.constant 0 : i32
    return %arg0, %c0_i32, %c0_i32_0 : i32, i32, i32
  }
}

</mosaic_0001>

<bundles_post_ra>
// kernel: tpu_custom_call.1
= control target key start
LH: loop header
LB: loop body
LE: loop exit
PB: predicated region body
PF: predicated region fallthrough
CT: control target
= control target key end

     0   :  { %s3303_s0 = inlined_call_operand.vmem [shape: bf16[2,1,32], index: 0, kind: input, shape index: {}]   ;;  %s3304_s1 = inlined_call_operand.vmem [shape: f32[2,64,32], index: 1, kind: input, shape index: {}]   ;;  %s3305_s2 = inlined_call_operand.vmem [shape: bf16[2,16,128], index: 2, kind: input, shape index: {}]   ;;  %s3306_s3 = inlined_call_operand.vmem [shape: bf16[32,32], index: 3, kind: input, shape index: {}]   ;;  %s3307_s4 = inlined_call_operand.vmem [shape: f32[1,32], index: 4, kind: input, shape index: {}]   ;;  %s3308_s5 = inlined_call_operand.vmem [shape: bf16[32,64], index: 5, kind: input, shape index: {}]   ;;  %s3309_s6 = inlined_call_operand.vmem [shape: f32[1,64], index: 6, kind: input, shape index: {}]   ;;  %s3310_s7 = inlined_call_operand.vmem [shape: bf16[128,32], index: 7, kind: input, shape index: {}]   ;;  %s3311_s8 = inlined_call_operand.vmem [shape: f32[1,32], index: 8, kind: input, shape index: {}]   ;;  %s3312_s9 = inlined_call_operand.vmem [shape: f32[1,32], index: 9, kind: input, shape index: {}]   ;;  %s3313_s10 = inlined_call_operand.vmem [shape: f32[1,32], index: 10, kind: input, shape index: {}]   ;;  %s3314_s11 = inlined_call_operand.vmem [shape: bf16[32,32], index: 11, kind: input, shape index: {}]   ;;  %s3315_s12 = inlined_call_operand.vmem [shape: f32[1,32], index: 12, kind: input, shape index: {}]   ;;  %s3316_s13 = inlined_call_operand.vmem [shape: f32[2,64,32], index: 13, kind: output, shape index: {0}]   ;;  %s3317_s14 = inlined_call_operand.hbm [shape: f32[2,1,32], index: 14, kind: output, shape index: {1}]  }
   0x1   :  { %3323 = sst [smem:[#allocation13_spill]] %s3303_s0 }
   0x2   :  { %3324 = sst [smem:[#allocation14_spill]] %s3304_s1 }
   0x3   :  { %20 = vsyncpa [#allocation6], 0 }
   0x4   :  { %22 = vsyncpa [#allocation6 + $0x1], 0  ;;  %s2795_s29 = smov 0   ;;  %s2797_s30 = smov 0  }
   0x5   :  { %s2799_s15 = smov 0   ;;  %s2801_s16 = smov 0  }
   0x6   :  { %s2803_s17 = smov 0   ;;  %s2805_s18 = smov 0  }
   0x7 LB: > { %3325 = sst [smem:[#allocation8_spill]] %s2696_s15  ;;  %s2175_s19 = sadd.s32 4294967295, %s2708_s18   ;;  %s2708_s18 = sphi %s2805_s18, %s28_s18   ;;  %s2704_s17 = sphi %s2803_s17, %s3342_s17   ;;  %s2700_s16 = sphi %s2801_s16, %s3338_s16   ;;  %s2696_s15 = sphi %s2799_s15, %s3337_s15   ;;  %s2692_s30 = sphi %s2797_s30, %s3341_s30   ;;  %s2688_s29 = sphi %s2795_s29, %s3340_s29  }
   0x8   : > { %3326 = sst [smem:[#allocation9_spill]] %s2704_s17  ;;  %s2176_s20 = sadd.s32 4294967294, %s2708_s18  }
   0x9   : > { %s40_s21 = sadd.s32 1, %s2704_s17  ;;  %s365_s22 = sadd.s32 1, %s2696_s15 }
   0xa   : > { %p42_p0 = scmp.ge.s32.totalorder %s40_s21, 2  ;;  %p375_p1 = scmp.ne.s32.totalorder %s2696_s15, %s2692_s30 }
   0xb   : > { %p376_p2 = scmp.eq.s32.totalorder %s2175_s19, 1  ;;  %p381_p3 = scmp.ne.s32.totalorder %s2692_s30, %s2688_s29 }
   0xc   : > { %s3344_s21 = smov (%p42_p0, %s40_s21), 0  ;;  %p382_p5 = scmp.eq.s32.totalorder %s2176_s20, 1 }
   0xd   : > { %3327 = sst [smem:[#allocation10_spill]] %s3344_s21  ;;  %p2835_p4 = por %p376_p2, %p375_p1 }
   0xe   : > { %s362_s24 = ssub.s32 %s2704_s17, %s3344_s21  ;;  %p2179_p6 = scmp.ge.s32.totalorder %s2708_s18, 1 }
   0xf   : > { %p363_p7 = scmp.eq.s32.totalorder %s362_s24, 0  ;;  %p2842_p8 = por %p382_p5, %p381_p3 }
  0x10   : > { %p457_p9 = scmp.lt.s32.totalorder %s2708_s18, 3 }
  0x11   : > { %s3329_s25 = scalar_select %p2842_p8, 1, 0 }
  0x12   : > { %s2848_s26 = scalar_select %p363_p7, %s2696_s15, %s365_s22  }
  0x13   : > { %3330 = sst [smem:[#allocation11_spill]] %s3329_s25  ;;  %p458_p10 = pnand %p2179_p6, %p457_p9 }
  0x14   : > { %3331 = sst [smem:[#allocation12_spill]] %s2848_s26  ;;  %v2539_v0 = vld [vmem:[%s3310_s7] sm:$0xff] (!%p458_p10)   ;;  %v2710_v1 = vmov (!%p458_p10), 0.0   ;;  %v2540_v2 = vld [vmem:[%s3310_s7 + $0x8] sm:$0xff] (!%p458_p10)   ;;  %vm2711_vm0 = vmmov (!%p458_p10), 0   ;;  %p523_p11 = scmp.lt.s32.totalorder (!%p458_p10), %s2700_s16, 1  ;;  %v580_v52 = vlaneseq (!%p458_p10) }
  0x15   : > { %461 = sbr.rel (%p458_p10) target bundleno = 2943 (0xb7f), region = 72  ;;  %2315 = vmatprep.subr.bf16.mxu0 (!%p458_p10), %v2710_v1  ;;  %2335 = vmatprep.subr.bf16.mxu1 (!%p458_p10), %v2710_v1  ;;  %v2541_v3 = vld [vmem:[%s3310_s7 + $0x10] sm:$0xff] (!%p458_p10)   ;;  %v2542_v4 = vld [vmem:[%s3310_s7 + $0x18] sm:$0xff] (!%p458_p10)   ;;  %v2543_v5 = vld [vmem:[%s3310_s7 + $0x20] sm:$0xff] (!%p458_p10)   ;;  %vm711_vm1 = vcmask (!%p458_p10), 261120   ;;  %s3332_s0 = sld [smem:[#allocation13_spill]] (!%p458_p10) }
  0x16   : > { %2316 = vmatpush3.bf16.msra.mxu0 (!%p458_p10), %v2539_v0  ;;  %2331 = vmatprep.mubr.msk.bf16.mxu0 (!%p458_p10), %vm2711_vm0, %v2710_v1  ;;  %v2544_v6 = vld [vmem:[%s3310_s7 + $0x28] sm:$0xff] (!%p458_p10)   ;;  %v2545_v7 = vld [vmem:[%s3310_s7 + $0x30] sm:$0xff] (!%p458_p10)   ;;  %v2546_v8 = vld [vmem:[%s3310_s7 + $0x38] sm:$0xff] (!%p458_p10)   ;;  %vm588_vm2 = vcmask (!%p458_p10), 523264   ;;  %v2712_v51 = vmov (!%p458_p10), 0   ;;  %v2951_v53 = vshrl.u32 (!%p458_p10), %v580_v52, 7 }
  0x17   : > { %2317 = vmatprep.subr.bf16.mxu0 (!%p458_p10), %v2710_v1  ;;  %2339 = vmatprep.mubr.msk.bf16.mxu1 (!%p458_p10), %vm2711_vm0, %v2710_v1  ;;  %v2186_v10 = vld [vmem:[%s3311_s8] ss:$0 sm:$0xff] (!%p458_p10)  ;;  %v2549_v30 = vld [vmem:[%s3308_s5 + $0x8] sm:$0xff] (!%p458_p10)   ;;  %589 = vst.msk [vmem:[#allocation2] sm:$0xff] (!%p458_p10), %vm588_vm2, %v2712_v51  ;;  %590 = vst.msk [vmem:[#allocation2 + $0x8] sm:$0xff] (!%p458_p10), %vm588_vm2, %v2712_v51  ;;  %vm866_vm3 = vcmask (!%p458_p10), 516096  }
  0x18   : > { %v2548_v29 = vld [vmem:[%s3308_s5] sm:$0xff] (!%p458_p10)   ;;  %v2938_v50 = vld [vmem:[%s3306_s3 + $0x8] sm:$0xff] (!%p458_p10)   ;;  %v2954_v54 = vsub.s32 (!%p458_p10), 0, %v2951_v53  ;;  %vm867_vm4 = vsmask.f32 (!%p458_p10), 256  ;;  %vm927_vm6 = vcmask (!%p458_p10), 130048  }
  0x19   : > { %2336 = vmatpush3.bf16.msra.mxu1 (!%p458_p10), %v2548_v29  ;;  %v2196_v39 = vld [vmem:[%s3312_s9] ss:$0 sm:$0xff] (!%p458_p10)  ;;  %vm868_vm5 = vmand (!%p458_p10), %vm866_vm3, %vm867_vm4  ;;  %s2713_s15 = smov (!%p458_p10), 96   ;;  %s2715_s20 = smov (!%p458_p10), 80   ;;  %vm977_vm8 = vcmask (!%p458_p10), 253952   ;;  %vm1042_vm9 = vcmask (!%p458_p10), 122880  }
  0x1a   : > { %2318 = vmatpush3.bf16.msra.mxu0 (!%p458_p10), %v2540_v2  ;;  %2337 = vmatprep.subr.bf16.mxu1 (!%p458_p10), %v2710_v1  ;;  %v2197_v43 = vld [vmem:[%s3313_s10] ss:$0 sm:$0xff] (!%p458_p10)  ;;  %s3333_s1 = sld [smem:[#allocation14_spill]] (!%p458_p10)  ;;  %vm1043_vm10 = vmand (!%p458_p10), %vm1042_vm9, %vm867_vm4  ;;  %s2718_s17 = smov (!%p458_p10), 16   ;;  %vm1183_vm11 = vcmask (!%p458_p10), 254080   ;;  %vm1910_vm13 = vcmask (!%p458_p10), 261248  }
  0x1b   : > { %2319 = vmatprep.subr.bf16.mxu0 (!%p458_p10), %v2710_v1  ;;  %v2930_v49 = vld [vmem:[%s3306_s3] sm:$0xff] (!%p458_p10)   ;;  %vm1184_vm12 = vmand (!%p458_p10), %vm1183_vm11, %vm867_vm4 }
  0x1c   : > { %s2865_s22 = scalar_select %p523_p11, %s2700_s16, 1  ;;  %v574_v55 = vld [vmem:[%s3309_s6] sm:$0x1] }
  0x1d   : > { %2338 = vmatpush3.bf16.msra.mxu1 %v2549_v30  ;;  %v762_v56 = vrot.slane %v574_v55, %v2954_v54 }
  0x1e   : > { %s2244_s28 = sshll.u32 %s2865_s22, 3  ;;  %2320 = vmatpush3.bf16.msra.mxu0 %v2541_v3  ;;  %2343 = vmatprep.subr.bf16.mxu1 %v2710_v1  ;;  %s3322_s24 = sshll.u32 %s2865_s22, 6 }
  0x1f   : > { %s540_s21 = scalar_lea.vmem %s3305_s2, %s2244_s28  ;;  %2321 = vmatprep.subr.bf16.mxu0 %v2710_v1 }
  0x20   : > { %v2547_v9 = vld [vmem:[%s540_s21] sm:$0xff]   ;;  %s525_s21 = scalar_lea.vmem %s3332_s0, %s2865_s22  ;;  %s534_s26 = scalar_lea.vmem %s3333_s1, %s3322_s24 }
  0x21   : > { %v564_v48 = vld [vmem:[%s525_s21] sm:$0x1]  ;;  %s2714_s21 = smov 112   ;;  %s2719_s24 = smov [#allocation5]  }
  0x22   : > { %2322 = vmatpush3.bf16.msra.mxu0 %v2542_v4  ;;  %v869_v4 = vld [vmem:[#allocation2 + $0x8] sm:$0x1]  ;;  %s2634_s0 = sshll.u32 %s2719_s24, 4  ;;  %s2635_s0 = int_to_ptr.vmem [resolvable:$false] %s2634_s0 }
  0x23   : > { %2323 = vmatprep.subr.bf16.mxu0 %v2710_v1  ;;  %s2636_s1 = scalar_lea.vmem %s2635_s0, 32 }
  0x26   : > { %2324 = vmatpush3.bf16.msra.mxu0 %v2543_v5 }
  0x27   : > { %2325 = vmatprep.subr.bf16.mxu0 %v2710_v1 }
  0x2a   : > { %2326 = vmatpush3.bf16.msra.mxu0 %v2544_v6 }
  0x2b   : > { %2327 = vmatprep.subr.bf16.mxu0 %v2710_v1 }
  0x2e   : > { %2328 = vmatpush3.bf16.msra.mxu0 %v2545_v7 }
  0x2f   : > { %2329 = vmatprep.subr.bf16.mxu0 %v2710_v1 }
  0x32   : > { %2330 = vmatpush3.bf16.msra.mxu0 %v2546_v8 }
  0x33   : > { %2367 = vmatprep.subr.bf16.mxu0 %v2710_v1 }
  0x35   : > { %2332 = vmatmul.mubr.bf16.vlgmr.msra.gmra.mrb[0].mxu0 %v2547_v9 }
  0x36   : > { %2371 = vmatprep.mubr.msk.bf16.mxu0 %vm2711_vm0, %v2710_v1 }
 0x108   : > { %v704_v11 = vpop.f32.mrb[0].mxu0 }
 0x109   : > { %v705_v12 = vadd.f32 %v2186_v10, %v704_v11  ;;  %v2333_v13 = vpop.f32.mrb[1].mxu0  ;;  %v2974_v11 = vld [vmem:[%s3307_s4] sm:$0x1] }
 0x10a   : > { %v707_v14 = vpop.f32.mrb[2].mxu0 }
 0x10b   : > { %v708_v15 = vadd.f32 %v2186_v10, %v707_v14  ;;  %v2334_v16 = vpop.f32.mrb[3].mxu0  ;;  %v712_v17 = vsel %vm711_vm1, %v705_v12, 0.0 }
 0x10c   : > { %713 = vadd.xlane.f32.xlu0 %v712_v17 }
 0x10d   : > { %v715_v18 = vsel %vm711_vm1, %v708_v15, 0.0 }
 0x110   : > { %716 = vadd.xlane.f32.xlu0 %v715_v18 }
 0x199   : > { %v714_v19 = vpop.xlane.xlu0 %713 }
 0x19a   : > { %v719_v20 = vmul.f32 0.03125, %v714_v19 }
 0x19c   : > { %v721_v21 = vsub.f32 %v705_v12, %v719_v20 }
 0x19d   : > { %v717_v22 = vpop.xlane.xlu0 %716 }
 0x19e   : > { %v720_v23 = vmul.f32 0.03125, %v717_v22  ;;  %v723_v24 = vmul.f32 %v721_v21, %v721_v21 }
 0x1a0   : > { %v722_v25 = vsub.f32 %v708_v15, %v720_v23  ;;  %v725_v26 = vsel %vm711_vm1, %v723_v24, 0.0 }
 0x1a1   : > { %726 = vadd.xlane.f32.xlu1 %v725_v26  ;;  %v581_v26 = vand.u32 127, %v580_v52 }
 0x1a2   : > { %v724_v27 = vmul.f32 %v722_v25, %v722_v25 }
 0x1a3   : > { %vm582_vm7 = vcmp.lt.s32.totalorder %v581_v26, 17 }
 0x1a4   : > { %v728_v28 = vsel %vm711_vm1, %v724_v27, 0.0  ;;  %v2716_v27 = vmov -1e+30  }
 0x1a5   : > { %729 = vadd.xlane.f32.xlu1 %v728_v28  ;;  %v3002_v28 = vsel %vm582_vm7, 0.0, %v2716_v27 }
 0x22e   : > { %v727_v31 = vpop.xlane.xlu1 %726 }
 0x22f   : > { %v731_v32 = vmul.f32 0.03125, %v727_v31 }
 0x231   : > { %v733_v33 = vadd.f32 1e-05, %v731_v32 }
 0x232   : > { %v730_v34 = vpop.xlane.xlu1 %729 }
 0x233   : > { %2554 = vrsqrt.f32 %v733_v33  ;;  %v732_v35 = vmul.f32 0.03125, %v730_v34 }
 0x235   : > { %v734_v36 = vadd.f32 1e-05, %v732_v35 }
 0x237   : > { %2556 = vrsqrt.f32 %v734_v36 }
 0x23d   : > { %v2555_v37 = vpop.eup %2554 }
 0x23e   : > { %v737_v38 = vmul.f32 %v2555_v37, %v721_v21 }
 0x240   : > { %v746_v42 = vmul.f32 %v2196_v39, %v737_v38 }
 0x241   : > { %v2557_v40 = vpop.eup %2556 }
 0x242   : > { %v738_v41 = vmul.f32 %v2557_v40, %v722_v25  ;;  %v755_v45 = vadd.f32 %v2197_v43, %v746_v42 }
 0x244   : > { %v747_v44 = vmul.f32 %v2196_v39, %v738_v41 }
 0x246   : > { %v756_v46 = vadd.f32 %v2197_v43, %v747_v44 }
 0x248   : > { %v757_v47 = vpack.c.bf16 %v756_v46, %v755_v45 }
 0x24a   : > { %2340 = vmatmul.mubr.msk.bf16.vlgmr.msra.gmra.mrb[0].mxu1 %vm711_vm1, %v757_v47 }
 0x24b   : > { %2344 = vmatpush3.bf16.msra.mxu1 %v2548_v29  ;;  %2347 = vmatprep.mubr.msk.bf16.mxu1 %vm2711_vm0, %v2710_v1 }
 0x24c   : > { %2345 = vmatprep.subr.bf16.mxu1 %v2710_v1 }
 0x24f   : > { %2346 = vmatpush3.bf16.msra.mxu1 %v2549_v30 }
 0x250   : > { %2351 = vmatprep.subr.bf16.mxu1 %v2710_v1 }
 0x252   : > { %2348 = vmatmul.mubr.msk.bf16.vlgmr.msra.gmra.mrb[4].mxu1 %vm711_vm1, %v564_v48 }
 0x253   : > { %2352 = vmatpush3.bf16.msra.mxu1 %v2930_v49  ;;  %2355 = vmatprep.mubr.msk.bf16.mxu1 %vm2711_vm0, %v2710_v1 }
 0x254   : > { %2353 = vmatprep.subr.bf16.mxu1 %v2710_v1 }
 0x257   : > { %2354 = vmatpush3.bf16.msra.mxu1 %v2938_v50 }
 0x258   : > { %2359 = vmatprep.subr.bf16.mxu1 %v2710_v1 }
 0x25a   : > { %2356 = vmatmul.mubr.msk.bf16.vlgmr.msra.gmra.mrb[8].mxu1 %vm711_vm1, %v564_v48 }
 0x25b   : > { %2363 = vmatprep.mubr.msk.bf16.mxu1 %vm2711_vm0, %v2710_v1 }
 0x31d   : > { %v813_v57 = vpop.f32.mrb[0].mxu1 }
 0x31e   : > { %v2341_v58 = vpop.f32.mrb[1].mxu1  ;;  %v814_v60 = vadd.f32 %v813_v57, %v762_v56  ;;  %v553_v57 = vld [vmem:[%s534_s26 + $0x8] sm:$0xff] }
 0x31f   : > { %v816_v59 = vpop.f32.mrb[2].mxu1 }
 0x320   : > { %v817_v61 = vadd.f32 %v816_v59, %v762_v56  ;;  %v2342_v62 = vpop.f32.mrb[3].mxu1  ;;  %v554_v59 = vld [vmem:[%s534_s26 + $0x10] sm:$0xff] }
 0x321   : > { %v556_v62 = vld [vmem:[%s534_s26 + $0x20] sm:$0xff] }
 0x322   : > { %v820_v63 = vpack.c.bf16 %v817_v61, %v814_v60  ;;  %v555_v60 = vld [vmem:[%s534_s26 + $0x18] sm:$0xff] }
 0x323   : > { %v561_v61 = vpack.c.bf16 %v555_v60, %v554_v59 }
 0x324   : > { %821 = vst.msk [vmem:[#allocation2] sm:$0xff] %vm588_vm2, %v820_v63  ;;  %v557_v63 = vld [vmem:[%s534_s26 + $0x28] sm:$0xff] }
 0x325   : > { %v859_v0 = vpop.f32.mrb[4].mxu1 }
 0x326   : > { %v860_v2 = vadd.f32 %v859_v0, %v574_v55  ;;  %v2349_v3 = vpop.f32.mrb[5].mxu1  ;;  %v562_v0 = vpack.c.bf16 %v557_v63, %v556_v62 }
 0x327   : > { %v862_v5 = vpop.f32.mrb[6].mxu1  ;;  %v559_v3 = vld [vmem:[%s534_s26 + $0x38] sm:$0xff] }
 0x328   : > { %v865_v6 = vpack.c.bf16 %v860_v2, %v860_v2  ;;  %v2350_v7 = vpop.f32.mrb[7].mxu1  ;;  %v558_v2 = vld [vmem:[%s534_s26 + $0x30] sm:$0xff] }
 0x32a   : > { %v870_v8 = vsel %vm868_vm5, %v865_v6, %v869_v4  ;;  %v563_v4 = vpack.c.bf16 %v559_v3, %v558_v2 }
 0x32b   : > { %871 = vst [vmem:[#allocation2 + $0x8] sm:$0x1] %v870_v8  ;;  %v2962_v9 = vld [vmem:[#allocation2] sm:$0xff] }
 0x32c   : > { %990 = vrot.lane.b32.xlu1 %v2962_v9, %s2713_s15  ;;  %v2968_v10 = vsel %vm927_vm6, %v2962_v9, 0 }
 0x32d   : > { %2360 = vmatpush3.bf16.xpose.msra.mxu1 %v2968_v10  ;;  %v918_v12 = vpop.f32.mrb[8].mxu1 }
 0x32e   : > { %2361 = vmatprep.subr.bf16.mxu1 %v2710_v1  ;;  %v2357_v13 = vpop.f32.mrb[9].mxu1  ;;  %v919_v15 = vadd.f32 %v918_v12, %v2974_v11 }
 0x32f   : > { %v921_v14 = vpop.f32.mrb[10].mxu1  ;;  %v3036_v13 = vld [vmem:[%s3314_s11] sm:$0xff]  }
 0x330   : > { %1050 = vrot.lane.b32.xlu1 %v2962_v9, %s2714_s21  ;;  %v2358_v16 = vpop.f32.mrb[11].mxu1  ;;  %v924_v19 = vpack.c.bf16 %v919_v15, %v919_v15 }
 0x332   : > { %v2980_v17 = vld [vmem:[#allocation2 + $0x8] sm:$0xff] }
 0x333   : > { %v2984_v18 = vsel %vm927_vm6, %v2980_v17, 0 }
 0x334   : > { %1052 = vrot.lane.b32.xlu1 %v2980_v17, %s2714_s21 }
 0x335   : > { %2362 = vmatpush3.bf16.xpose.msra.mxu1 %v2984_v18 }
 0x336   : > { %2383 = vmatprep.subr.bf16.mxu1 %v2710_v1 }
 0x338   : > { %1048 = vrot.lane.b32.xlu1 %v924_v19, %s2714_s21 }
 0x33c   : > { %1113 = vrot.lane.b32.xlu1 %v2962_v9, %s2715_s20  ;;  %2364 = vmatmul.mubr.msk.bf16.vlgmr.msra.gmra.mrb[12].mxu1 %vm927_vm6, %v924_v19 }
 0x33d   : > { %2387 = vmatprep.mubr.msk.bf16.mxu1 %vm2711_vm0, %v2710_v1 }
 0x340   : > { %1115 = vrot.lane.b32.xlu1 %v2980_v17, %s2715_s20 }
 0x39e   : > { %v991_v20 = vpop.permute.xlu1 %990 }
 0x39f   : > { %2368 = vmatpush3.bf16.msra.mxu0 %v991_v20  ;;  %v1044_v20 = vld [vmem:[#allocation4] sm:$0x1] }
 0x3a0   : > { %2369 = vmatprep.subr.bf16.mxu0 %v2710_v1 }
 0x3a2   : > { %v1051_v21 = vpop.permute.xlu1 %1050 }
 0x3a3   : > { %v1058_v41 = vsel %vm927_vm6, %v1051_v21, 0 }
 0x3a6   : > { %v1053_v22 = vpop.permute.xlu1 %1052 }
 0x3a7   : > { %v1061_v42 = vsel %vm927_vm6, %v1053_v22, 0  ;;  %v3045_v22 = vld [vmem:[%s3314_s11 + $0x8] sm:$0xff]  }
 0x3aa   : > { %v1049_v23 = vpop.permute.xlu1 %1048 }
 0x3ae   : > { %v1114_v24 = vpop.permute.xlu1 %1113 }
 0x3af   : > { %2384 = vmatpush3.bf16.msra.mxu1 %v1114_v24  ;;  %v1249_v24 = vrot.slane %v2974_v11, %v2954_v54 }
 0x3b0   : > { %2385 = vmatprep.subr.bf16.mxu1 %v2710_v1 }
 0x3b2   : > { %v1116_v25 = vpop.permute.xlu1 %1115 }
 0x3b3   : > { %2386 = vmatpush3.bf16.msra.mxu1 %v1116_v25 }
 0x3b4   : > { %2391 = vmatprep.subr.bf16.mxu1 %v2710_v1 }
 0x40f   : > { %v971_v29 = vpop.f32.mrb[12].mxu1 }
 0x410   : > { %v972_v30 = vadd.f32 %v971_v29, %v3002_v28  ;;  %v2365_v31 = vpop.f32.mrb[13].mxu1 }
 0x411   : > { %v974_v32 = vpop.f32.mrb[14].mxu1 }
 0x412   : > { %v2366_v33 = vpop.f32.mrb[15].mxu1  ;;  %v978_v34 = vsel %vm977_vm8, %v972_v30, -inf }
 0x413   : > { %979 = vmax.xlane.f32.xlu0 %v978_v34 }
 0x429   : > { %992 = vrot.lane.b32.xlu0 %v2980_v17, %s2713_s15 }
 0x4a0   : > { %v980_v35 = vpop.xlane.xlu0 %979 }
 0x4a1   : > { %v981_v36 = vsub.f32 %v972_v30, %v980_v35 }
 0x4a3   : > { %v982_v37 = vmul.f32 1.442695, %v981_v36 }
 0x4a4   : > { %v993_v38 = vpop.permute.xlu0 %992 }
 0x4a5   : > { %2558 = vpow2.f32 %v982_v37  ;;  %2370 = vmatpush3.bf16.msra.mxu0 %v993_v38 }
 0x4a6   : > { %2375 = vmatprep.subr.bf16.mxu0 %v2710_v1 }
 0x4af   : > { %v2559_v39 = vpop.eup %2558 }
 0x4b0   : > { %v987_v40 = vpack.c.bf16 %v2559_v39, %v2559_v39 }
 0x4b2   : > { %2372 = vmatmul.mubr.msk.bf16.vlgmr.msra.gmra.mrb[4].mxu0 %vm711_vm1, %v987_v40 }
 0x4b3   : > { %2376 = vmatpush3.bf16.xpose.msra.mxu0 %v1058_v41  ;;  %2379 = vmatprep.mubr.msk.bf16.mxu0 %vm2711_vm0, %v2710_v1 }
 0x4b4   : > { %2377 = vmatprep.subr.bf16.mxu0 %v2710_v1 }
 0x4bb   : > { %2378 = vmatpush3.bf16.xpose.msra.mxu0 %v1061_v42 }
 0x4bc   : > { %2399 = vmatprep.subr.bf16.mxu0 %v2930_v49 }
 0x4c2   : > { %2380 = vmatmul.mubr.msk.bf16.vlgmr.msra.gmra.mrb[8].mxu0 %vm927_vm6, %v1049_v23 }
 0x4c3   : > { %2400 = vmatpush3.bf16.msra.mxu0 %v2930_v49  ;;  %v984_v49 = vsel %vm977_vm8, %v2559_v39, 0.0 }
 0x4c4   : > { %2401 = vmatprep.subr.bf16.mxu0 %v2938_v50 }
 0x4c7   : > { %2402 = vmatpush3.bf16.msra.mxu0 %v2938_v50  ;;  %v552_v50 = vld [vmem:[%s534_s26] sm:$0xff] }
 0x4c8   : > { %v560_v58 = vpack.c.bf16 %v553_v57, %v552_v50 }
 0x4ca   : > { %2403 = vmatprep.mubr.msk.bf16.mxu0 %vm711_vm1, %v560_v58 }
 0x4cb   : > { %2404 = vmatmul.mubr.msk.bf16.vlgmr.msra.gmra.mrb[12].mxu0 %vm711_vm1, %v561_v61 }
 0x4cc   : > { %2407 = vmatprep.mubr.msk.bf16.mxu0 %vm711_vm1, %v562_v0 }
 0x4d3   : > { %2408 = vmatmul.mubr.msk.bf16.gmra.mrb[16].mxu0 %vm711_vm1, %v563_v4 }
 0x585   : > { %v1033_v43 = vpop.f32.mrb[4].mxu0 }
 0x586   : > { %v2373_v44 = vpop.f32.mrb[5].mxu0 }
 0x587   : > { %v1036_v45 = vpop.f32.mrb[6].mxu0 }
 0x588   : > { %v2374_v46 = vpop.f32.mrb[7].mxu0  ;;  %v2717_v45 = vmov 1966171168  }
 0x589   : > { %v1167_v46 = vunpack.c.l.s4 %v2717_v45 }
 0x595   : > { %v1097_v47 = vpop.f32.mrb[8].mxu0 }
 0x596   : > { %v1098_v48 = vadd.f32 %v1097_v47, %v3002_v28  ;;  %v2381_v51 = vpop.f32.mrb[9].mxu0  ;;  %v1168_v47 = vunpack.c.0.s8 %v1167_v46 }
 0x597   : > { %v1100_v52 = vpop.f32.mrb[10].mxu0 }
 0x598   : > { %v2382_v55 = vpop.f32.mrb[11].mxu0  ;;  %v1103_v56 = vsel %vm977_vm8, %v1098_v48, -inf }
 0x599   : > { %1104 = vmax.xlane.f32.xlu0 %v1103_v56  ;;  %v1171_v55 = vsub.s32 %v1168_v47, %v2951_v53 }
 0x59d   : > { %985 = vadd.xlane.f32.xlu0 %v984_v49 }
 0x59e   : > { %v2405_v25 = vpop.f32.mrb[12].mxu0 }
 0x59f   : > { %v1319_v26 = vadd.f32 %v2405_v25, %v1249_v24  ;;  %v1310_v27 = vpop.f32.mrb[13].mxu0 }
 0x5a0   : > { %v1311_v29 = vadd.f32 %v1310_v27, %v1249_v24  ;;  %v2406_v30 = vpop.f32.mrb[14].mxu0 }
 0x5a1   : > { %v1322_v31 = vadd.f32 %v2406_v30, %v1249_v24 }
 0x5a3   : > { %v1342_v33 = vpack.c.bf16 %v1322_v31, %v1319_v26 }
 0x626   : > { %v1105_v5 = vpop.xlane.xlu0 %1104 }
 0x627   : > { %v1106_v6 = vsub.f32 %v1098_v48, %v1105_v5 }
 0x629   : > { %v1107_v7 = vmul.f32 1.442695, %v1106_v6 }
 0x62a   : > { %v986_v8 = vpop.xlane.xlu0 %985 }
 0x62b   : > { %2560 = vpow2.f32 %v1107_v7  ;;  %v3093_v7 = vld [vmem:[%s3315_s12] sm:$0x1] }
 0x62c   : > { %2562 = vrcp.f32 %v986_v8 }
 0x635   : > { %v2561_v12 = vpop.eup %2560 }
 0x636   : > { %v2563_v14 = vpop.eup %2562  ;;  %v1109_v15 = vsel %vm977_vm8, %v2561_v12, 0.0  ;;  %v1112_v16 = vpack.c.bf16 %v2561_v12, %v2561_v12 }
 0x637   : > { %v1040_v19 = vmul.f32 %v2563_v14, %v1033_v43  ;;  %1110 = vadd.xlane.f32.xlu1 %v1109_v15 }
 0x638   : > { %2388 = vmatmul.mubr.msk.bf16.vlgmr.msra.gmra.mrb[16].mxu1 %vm711_vm1, %v1112_v16 }
 0x639   : > { %v1041_v21 = vpack.c.bf16 %v1040_v19, %v1040_v19  ;;  %2392 = vmatpush3.bf16.msra.mxu1 %v3036_v13  ;;  %2395 = vmatprep.mubr.msk.bf16.mxu1 %vm2711_vm0, %v2710_v1 }
 0x63a   : > { %2393 = vmatprep.subr.bf16.mxu1 %v2710_v1  ;;  %v1313_v1 = vpop.f32.mrb[15].mxu0 }
 0x63b   : > { %v1045_v23 = vsel %vm1043_vm10, %v1041_v21, %v1044_v20  ;;  %v1314_v32 = vadd.f32 %v1313_v1, %v1249_v24  ;;  %v2409_v35 = vpop.f32.mrb[16].mxu0 }
 0x63c   : > { %1046 = vst [vmem:[#allocation4] sm:$0x1] %v1045_v23  ;;  %v1335_v36 = vadd.f32 %v2409_v35, %v1249_v24  ;;  %v1326_v37 = vpop.f32.mrb[17].mxu0 }
 0x63d   : > { %2394 = vmatpush3.bf16.msra.mxu1 %v3045_v22  ;;  %v1341_v34 = vpack.c.bf16 %v1314_v32, %v1311_v29  ;;  %v1327_v38 = vadd.f32 %v1326_v37, %v1249_v24  ;;  %v2410_v39 = vpop.f32.mrb[18].mxu0 }
 0x63e   : > { %2471 = vmatprep.subr.msk.bf16.mxu1 %vm927_vm6, %v2962_v9  ;;  %v1338_v40 = vadd.f32 %v2410_v39, %v1249_v24  ;;  %v1329_v41 = vpop.f32.mrb[19].mxu0 }
 0x63f   : > { %v1330_v11 = vadd.f32 %v1329_v41, %v1249_v24 }
 0x640   : > { %v1344_v42 = vpack.c.bf16 %v1338_v40, %v1335_v36 }
 0x641   : > { %v1343_v43 = vpack.c.bf16 %v1330_v11, %v1327_v38 }
 0x643   : > { %v1185_v53 = vld [vmem:[#allocation4] sm:$0x1] }
 0x648   : > { %1628 = vrot.lane.b32.xlu1 %v2962_v9, %s2714_s21 }
 0x64c   : > { %1622 = vrot.lane.b32.xlu1 %v1342_v33, %s2714_s21 }
 0x650   : > { %1626 = vrot.lane.b32.xlu1 %v1344_v42, %s2714_s21 }
 0x6c4   : > { %v1111_v44 = vpop.xlane.xlu1 %1110 }
 0x6c5   : > { %2564 = vrcp.f32 %v1111_v44 }
 0x6c8   : > { %v1629_v4 = vpop.permute.xlu1 %1628 }
 0x6c9   : > { %v1645_v5 = vsel %vm927_vm6, %v1629_v4, 0 }
 0x6cf   : > { %v2565_v48 = vpop.eup %2564 }
 0x70b   : > { %v1156_v51 = vpop.f32.mrb[16].mxu1 }
 0x70c   : > { %v1163_v52 = vmul.f32 %v2565_v48, %v1156_v51  ;;  %v2389_v56 = vpop.f32.mrb[17].mxu1 }
 0x70d   : > { %v1159_v49 = vpop.f32.mrb[18].mxu1 }
 0x70e   : > { %v1164_v50 = vpack.c.bf16 %v1163_v52, %v1163_v52  ;;  %v2390_v57 = vpop.f32.mrb[19].mxu1 }
 0x710   : > { %v1172_v58 = vrot.slane %v1164_v50, %v1171_v55 }
 0x712   : > { %v1179_v59 = vrot.slane %v1172_v58, %v1171_v55 }
 0x714   : > { %1180 = vrot.lane.b32.xlu0 %v1179_v59, %s2718_s17 }
 0x718   : > { %1630 = vrot.lane.b32.xlu0 %v2980_v17, %s2714_s21 }
 0x71c   : > { %1620 = vrot.lane.b32.xlu0 %v1341_v34, %s2714_s21 }
 0x720   : > { %1624 = vrot.lane.b32.xlu0 %v1343_v43, %s2714_s21  ;;  %s521_s21 = sand.u32 1, %s2692_s30  }
 0x721   : > { %s3098_s25 = scalar_lea.vmem [#allocation5], %s521_s21  ;;  %s2032_s26 = scalar_lea.sflag [#allocation6], %s521_s21 }
 0x724   : > { %1509 = vrot.lane.b32.xlu0 %v2962_v9, %s2713_s15 }
 0x786   : > { %v1181_v60 = vpop.permute.xlu0 %1180 }
 0x787   : > { %v1186_v61 = vsel %vm1184_vm12, %v1181_v60, %v1185_v53 }
 0x788   : > { %1187 = vst [vmem:[#allocation4] sm:$0x1] %v1186_v61 }
 0x78a   : > { %v1631_v62 = vpop.permute.xlu0 %1630 }
 0x78e   : > { %v1621_v63 = vpop.permute.xlu0 %1620 }
 0x78f   : > { %v1188_v0 = vld [vmem:[#allocation4] sm:$0x1] }
 0x790   : > { %2396 = vmatmul.mubr.msk.bf16.vlgmr.msra.gmra.mrb[20].mxu1 %vm711_vm1, %v1188_v0 }
 0x791   : > { %2412 = vmatpush3.bf16.xpose.msra.mxu1 %v2968_v10  ;;  %2415 = vmatprep.mubr.msk.bf16.mxu1 %vm927_vm6, %v1341_v34  ;;  %v1648_v10 = vsel %vm927_vm6, %v1631_v62, 0 }
 0x792   : > { %2472 = vmatprep.subr.msk.bf16.mxu1 %vm927_vm6, %v2980_v17  ;;  %v1625_v2 = vpop.permute.xlu0 %1624 }
 0x796   : > { %v1510_v3 = vpop.permute.xlu0 %1509 }
 0x797   : > { %2423 = vmatprep.subr.bf16.mxu0 %v1510_v3 }
 0x798   : > { %2424 = vmatpush3.bf16.msra.mxu0 %v1510_v3 }
 0x799   : > { %2414 = vmatpush3.bf16.xpose.msra.mxu1 %v2984_v18  ;;  %v1623_v18 = vpop.permute.xlu1 %1622 }
 0x79a   : > { %2473 = vmatprep.subr.msk.bf16.mxu1 %vm927_vm6, %v1629_v4 }
 0x79d   : > { %v1627_v6 = vpop.permute.xlu1 %1626 }
 0x7a0   : > { %2416 = vmatmul.mubr.msk.bf16.vlgmr.msra.gmra.mrb[24].mxu1 %vm927_vm6, %v1342_v33 }
 0x7a1   : > { %2419 = vmatprep.mubr.msk.bf16.mxu1 %vm927_vm6, %v1343_v43  ;;  %2436 = vmatpush3.bf16.xpose.msra.mxu1 %v1645_v5 }
 0x7a2   : > { %2474 = vmatprep.subr.msk.bf16.mxu1 %vm927_vm6, %v1631_v62 }
 0x7a8   : > { %2420 = vmatmul.mubr.msk.bf16.gmra.mrb[28].mxu1 %vm927_vm6, %v1344_v42 }
 0x7a9   : > { %2438 = vmatpush3.bf16.xpose.msra.mxu1 %v1648_v10  ;;  %2439 = vmatprep.mubr.msk.bf16.mxu1 %vm927_vm6, %v1621_v63 }
 0x7aa   : > { %2459 = vmatprep.subr.bf16.mxu1 %v3036_v13 }
 0x7b0   : > { %2440 = vmatmul.mubr.msk.bf16.vlgmr.msra.gmra.mrb[32].mxu1 %vm927_vm6, %v1623_v18 }
 0x7b1   : > { %2443 = vmatprep.mubr.msk.bf16.mxu1 %vm927_vm6, %v1625_v2  ;;  %2460 = vmatpush3.bf16.msra.mxu1 %v3036_v13 }
 0x7b2   : > { %2461 = vmatprep.subr.bf16.mxu1 %v3045_v22 }
 0x7b5   : > { %2462 = vmatpush3.bf16.msra.mxu1 %v3045_v22 }
 0x7b8   : > { %2444 = vmatmul.mubr.msk.bf16.gmra.mrb[36].mxu1 %vm927_vm6, %v1627_v6 }
 0x863   : > { %v1238_v8 = vpop.f32.mrb[20].mxu1 }
 0x864   : > { %v1239_v12 = vadd.f32 %v1238_v8, %v3093_v7  ;;  %v2397_v14 = vpop.f32.mrb[21].mxu1 }
 0x865   : > { %v1241_v15 = vpop.f32.mrb[22].mxu1 }
 0x866   : > { %v2398_v16 = vpop.f32.mrb[23].mxu1  ;;  %1244 = vst.msk [vmem:[%s3098_s25] sm:$0x1] %vm977_vm8, %v1239_v12 }
 0x873   : > { %v2417_v13 = vpop.f32.mrb[24].mxu1 }
 0x874   : > { %v3103_v19 = vadd.f32 %v2417_v13, %v3002_v28  ;;  %v1400_v20 = vpop.f32.mrb[25].mxu1 }
 0x875   : > { %v2418_v21 = vpop.f32.mrb[26].mxu1  ;;  %v3106_v22 = vadd.f32 %v1400_v20, %v3002_v28 }
 0x876   : > { %v1403_v23 = vpop.f32.mrb[27].mxu1  ;;  %v1437_v24 = vsel %vm711_vm1, %v3103_v19, -inf  ;;  %v3116_v27 = vadd.f32 %v2418_v21, %v3002_v28 }
 0x877   : > { %v3111_v25 = vadd.f32 %v1403_v23, %v3002_v28  ;;  %1438 = vmax.xlane.f32.xlu0 %v1437_v24  ;;  %v1431_v29 = vsel %vm711_vm1, %v3106_v22, -inf }
 0x878   : > { %v1440_v35 = vsel %vm711_vm1, %v3116_v27, -inf }
 0x879   : > { %v1434_v26 = vsel %vm711_vm1, %v3111_v25, -inf }
 0x87a   : > { %1435 = vmax.xlane.f32.xlu1 %v1434_v26 }
 0x87b   : > { %v2421_v30 = vpop.f32.mrb[28].mxu1  ;;  %1432 = vmax.xlane.f32.xlu0 %v1431_v29 }
 0x87c   : > { %v1416_v31 = vpop.f32.mrb[29].mxu1  ;;  %v3121_v32 = vadd.f32 %v2421_v30, %v3002_v28 }
 0x87d   : > { %v2422_v1 = vpop.f32.mrb[30].mxu1  ;;  %v3134_v38 = vadd.f32 %v1416_v31, %v3002_v28 }
 0x87e   : > { %v3124_v33 = vadd.f32 %v2422_v1, %v3002_v28  ;;  %v1419_v34 = vpop.f32.mrb[31].mxu1  ;;  %v1449_v39 = vsel %vm711_vm1, %v3121_v32, -inf }
 0x87f   : > { %1441 = vmax.xlane.f32.xlu0 %v1440_v35  ;;  %v3129_v36 = vadd.f32 %v1419_v34, %v3002_v28  ;;  %v1443_v46 = vsel %vm711_vm1, %v3134_v38, -inf }
 0x880   : > { %v1452_v37 = vsel %vm711_vm1, %v3124_v33, -inf }
 0x881   : > { %1453 = vmax.xlane.f32.xlu1 %v1452_v37  ;;  %v1446_v11 = vsel %vm711_vm1, %v3129_v36, -inf }
 0x883   : > { %v2441_v40 = vpop.f32.mrb[32].mxu1  ;;  %1450 = vmax.xlane.f32.xlu0 %v1449_v39 }
 0x884   : > { %v1684_v41 = vpop.f32.mrb[33].mxu1  ;;  %v3141_v43 = vadd.f32 %v2441_v40, %v3002_v28 }
 0x885   : > { %v2442_v42 = vpop.f32.mrb[34].mxu1  ;;  %1447 = vmax.xlane.f32.xlu1 %v1446_v11  ;;  %v1685_v51 = vadd.f32 %v1684_v41, %v3002_v28 }
 0x886   : > { %v3144_v44 = vadd.f32 %v2442_v42, %v3002_v28  ;;  %v1687_v45 = vpop.f32.mrb[35].mxu1  ;;  %v1721_v52 = vsel %vm711_vm1, %v3141_v43, -inf }
 0x887   : > { %1444 = vmax.xlane.f32.xlu0 %v1443_v46  ;;  %v1688_v47 = vadd.f32 %v1687_v45, %v3002_v28  ;;  %v1715_v59 = vsel %vm711_vm1, %v1685_v51, -inf }
 0x888   : > { %v1724_v48 = vsel %vm711_vm1, %v3144_v44, -inf }
 0x889   : > { %1725 = vmax.xlane.f32.xlu1 %v1724_v48  ;;  %v1718_v50 = vsel %vm711_vm1, %v1688_v47, -inf }
 0x88b   : > { %v2445_v55 = vpop.f32.mrb[36].mxu1  ;;  %1722 = vmax.xlane.f32.xlu0 %v1721_v52 }
 0x88c   : > { %v3155_v56 = vadd.f32 %v2445_v55, %v3002_v28  ;;  %v1700_v49 = vpop.f32.mrb[37].mxu1 }
 0x88d   : > { %v2446_v57 = vpop.f32.mrb[38].mxu1  ;;  %1719 = vmax.xlane.f32.xlu1 %v1718_v50  ;;  %v3160_v53 = vadd.f32 %v1700_v49, %v3002_v28 }
 0x88e   : > { %v1703_v58 = vpop.f32.mrb[39].mxu1  ;;  %v1733_v60 = vsel %vm711_vm1, %v3155_v56, -inf  ;;  %v3165_v61 = vadd.f32 %v2446_v57, %v3002_v28 }
 0x88f   : > { %1716 = vmax.xlane.f32.xlu0 %v1715_v59  ;;  %v1727_v62 = vsel %vm711_vm1, %v3160_v53, -inf  ;;  %v3170_v63 = vadd.f32 %v1703_v58, %v3002_v28 }
 0x890   : > { %v1736_v0 = vsel %vm711_vm1, %v3165_v61, -inf }
 0x891   : > { %1734 = vmax.xlane.f32.xlu1 %v1733_v60  ;;  %v1730_v2 = vsel %vm711_vm1, %v3170_v63, -inf }
 0x895   : > { %1728 = vmax.xlane.f32.xlu1 %v1727_v62 }
 0x899   : > { %1737 = vmax.xlane.f32.xlu1 %v1736_v0 }
 0x89d   : > { %1731 = vmax.xlane.f32.xlu1 %v1730_v2 }
 0x8a5   : > { %1791 = vrot.lane.b32.xlu0 %v2962_v9, %s2715_s20 }
 0x8a9   : > { %1793 = vrot.lane.b32.xlu0 %v2980_v17, %s2715_s20  ;;  %s2048_s20 = sshll.u32 %s3098_s25, 4  ;;  %s2049_s20 = int_to_ptr.vmem [resolvable:$true] %s2048_s20 }
 0x8aa   : > { %s2630_s28 = scalar_lea.vmem %s2049_s20, 16  ;;  %p2637_p1 = scmp.lt.s32.totalorder %s2049_s20, %s2635_s0 }
 0x8ab   : > { %p2631_p12 = scmp.ne.s32.totalorder %s2049_s20, %s2630_s28  ;;  %p2638_p2 = scmp.lt.s32.totalorder %s2636_s1, %s2630_s28 }
 0x8ad   : > { %p2632_p13 = pnand %p2631_p12, %p2835_p4  ;;  %p2639_p3 = por %p2638_p2, %p2637_p1 }
 0x8ae   : > { %1511 = vrot.lane.b32.xlu1 %v2980_v17, %s2713_s15  ;;  %s2240_s15 = sshll.u32 %s2700_s16, 4 }
 0x8af   : > { %p2633_p0 = pneg %p2632_p13 }
 0x8b1   : > { %p2640_p5 = pnand %p2639_p3, %p2633_p0 }
 0x904   : > { %v1439_v3 = vpop.xlane.xlu0 %1438 }
 0x907   : > { %v1436_v28 = vpop.xlane.xlu1 %1435 }
 0x908   : > { %v1456_v4 = vsub.f32 %v3111_v25, %v1436_v28  ;;  %v1433_v5 = vpop.xlane.xlu0 %1432 }
 0x909   : > { %v1455_v10 = vsub.f32 %v3106_v22, %v1433_v5  ;;  %v1457_v22 = vsub.f32 %v3103_v19, %v1439_v3 }
 0x90a   : > { %v1465_v18 = vmul.f32 1.442695, %v1456_v4 }
 0x90b   : > { %v1463_v6 = vmul.f32 1.442695, %v1455_v10  ;;  %v1467_v34 = vmul.f32 1.442695, %v1457_v22 }
 0x90c   : > { %2566 = vpow2.f32 %v1465_v18  ;;  %v1442_v8 = vpop.xlane.xlu0 %1441 }
 0x90d   : > { %2568 = vpow2.f32 %v1463_v6  ;;  %v1458_v26 = vsub.f32 %v3116_v27, %v1442_v8 }
 0x90e   : > { %v1454_v12 = vpop.xlane.xlu1 %1453 }
 0x90f   : > { %v1469_v41 = vmul.f32 1.442695, %v1458_v26 }
 0x910   : > { %v1451_v9 = vpop.xlane.xlu0 %1450 }
 0x911   : > { %v1461_v45 = vsub.f32 %v3121_v32, %v1451_v9 }
 0x912   : > { %v1448_v14 = vpop.xlane.xlu1 %1447 }
 0x913   : > { %v1460_v35 = vsub.f32 %v3129_v36, %v1448_v14  ;;  %v1462_v36 = vsub.f32 %v3124_v33, %v1454_v12  ;;  %v1475_v48 = vmul.f32 1.442695, %v1461_v45 }
 0x914   : > { %v1445_v15 = vpop.xlane.xlu0 %1444 }
 0x915   : > { %v1459_v30 = vsub.f32 %v3134_v38, %v1445_v15  ;;  %v1473_v42 = vmul.f32 1.442695, %v1460_v35  ;;  %v1477_v52 = vmul.f32 1.442695, %v1462_v36 }
 0x916   : > { %v3184_v16 = vpop.eup %2566  ;;  %v1726_v13 = vpop.xlane.xlu1 %1725 }
 0x917   : > { %v3186_v17 = vpop.eup %2568  ;;  %v1742_v39 = vsub.f32 %v3144_v44, %v1726_v13  ;;  %v1471_v11 = vmul.f32 1.442695, %v1459_v30 }
 0x918   : > { %v1723_v20 = vpop.xlane.xlu0 %1722  ;;  %v1503_v21 = vpack.c.bf16 %v3184_v16, %v3186_v17 }
 0x919   : > { %v1741_v24 = vsub.f32 %v3141_v43, %v1723_v20  ;;  %v1753_v43 = vmul.f32 1.442695, %v1742_v39 }
 0x91a   : > { %v1720_v23 = vpop.xlane.xlu1 %1719  ;;  %2427 = vmatprep.mubr.msk.bf16.mxu0 %vm711_vm1, %v1503_v21 }
 0x91b   : > { %v1740_v25 = vsub.f32 %v1688_v47, %v1720_v23  ;;  %v1751_v19 = vmul.f32 1.442695, %v1741_v24 }
 0x91c   : > { %v1717_v29 = vpop.xlane.xlu0 %1716 }
 0x91d   : > { %v1749_v31 = vmul.f32 1.442695, %v1740_v25  ;;  %v1739_v1 = vsub.f32 %v1685_v51, %v1717_v29  ;;  %v1479_v25 = vsel %vm711_vm1, %v3186_v17, 0.0  ;;  %v1482_v29 = vsel %vm711_vm1, %v3184_v16, 0.0 }
 0x91e   : > { %v1735_v37 = vpop.xlane.xlu1 %1734 }
 0x91f   : > { %2570 = vpow2.f32 %v1749_v31  ;;  %v1747_v40 = vmul.f32 1.442695, %v1739_v1  ;;  %v1745_v44 = vsub.f32 %v3155_v56, %v1735_v37 }
 0x921   : > { %2572 = vpow2.f32 %v1747_v40  ;;  %v1759_v49 = vmul.f32 1.442695, %v1745_v44 }
 0x922   : > { %2574 = vpow2.f32 %v1467_v34  ;;  %v1729_v27 = vpop.xlane.xlu1 %1728 }
 0x923   : > { %2576 = vpow2.f32 %v1751_v19  ;;  %v1743_v38 = vsub.f32 %v3160_v53, %v1729_v27 }
 0x924   : > { %2578 = vpow2.f32 %v1469_v41 }
 0x925   : > { %2580 = vpow2.f32 %v1471_v11  ;;  %v1755_v47 = vmul.f32 1.442695, %v1743_v38 }
 0x926   : > { %2582 = vpow2.f32 %v1473_v42  ;;  %v1738_v46 = vpop.xlane.xlu1 %1737 }
 0x927   : > { %2584 = vpow2.f32 %v1753_v43  ;;  %v1746_v55 = vsub.f32 %v3165_v61, %v1738_v46  ;;  %v1792_v61 = vpop.permute.xlu0 %1791 }
 0x928   : > { %2586 = vpow2.f32 %v1755_v47 }
 0x929   : > { %v2571_v51 = vpop.eup %2570  ;;  %2588 = vpow2.f32 %v1475_v48  ;;  %v1761_v53 = vmul.f32 1.442695, %v1746_v55 }
 0x92a   : > { %v1732_v50 = vpop.xlane.xlu1 %1731  ;;  %v1766_v57 = vsel %vm711_vm1, %v2571_v51, 0.0  ;;  %2590 = vpow2.f32 %v1477_v52 }
 0x92b   : > { %v2573_v58 = vpop.eup %2572  ;;  %v1744_v32 = vsub.f32 %v3170_v63, %v1732_v50  ;;  %1767 = vadd.xlane.f32.xlu1 %v1766_v57  ;;  %2592 = vpow2.f32 %v1759_v49  ;;  %v1794_v10 = vpop.permute.xlu0 %1793 }
 0x92c   : > { %v2575_v33 = vpop.eup %2574  ;;  %v1763_v56 = vsel %vm711_vm1, %v2573_v58, 0.0  ;;  %v1787_v21 = vpack.c.bf16 %v2571_v51, %v2573_v58 }
 0x92d   : > { %v2577_v59 = vpop.eup %2576  ;;  %v1757_v60 = vmul.f32 1.442695, %v1744_v32  ;;  %1764 = vadd.xlane.f32.xlu0 %v1763_v56  ;;  %v1485_v31 = vsel %vm711_vm1, %v2575_v33, 0.0 }
 0x92e   : > { %v2579_v62 = vpop.eup %2578  ;;  %v1512_v0 = vpop.permute.xlu1 %1511  ;;  %v1769_v63 = vsel %vm711_vm1, %v2577_v59, 0.0 }
 0x92f   : > { %v2581_v2 = vpop.eup %2580  ;;  %2594 = vpow2.f32 %v1757_v60  ;;  %2425 = vmatprep.subr.bf16.mxu0 %v1512_v0  ;;  %v1504_v4 = vpack.c.bf16 %v2579_v62, %v2575_v33  ;;  %v1488_v1 = vsel %vm711_vm1, %v2579_v62, 0.0 }
 0x930   : > { %v2583_v3 = vpop.eup %2582  ;;  %2426 = vmatpush3.bf16.msra.mxu0 %v1512_v0  ;;  %2596 = vpow2.f32 %v1761_v53  ;;  %v1491_v34 = vsel %vm711_vm1, %v2581_v2, 0.0 }
 0x931   : > { %v2585_v28 = vpop.eup %2584  ;;  %1770 = vadd.xlane.f32.xlu0 %v1769_v63  ;;  %2447 = vmatprep.subr.bf16.mxu0 %v1792_v61  ;;  %v1505_v5 = vpack.c.bf16 %v2583_v3, %v2581_v2  ;;  %v1494_v35 = vsel %vm711_vm1, %v2583_v3, 0.0 }
 0x932   : > { %v1772_v18 = vsel %vm711_vm1, %v2585_v28, 0.0  ;;  %v2587_v6 = vpop.eup %2586  ;;  %v1788_v26 = vpack.c.bf16 %v2585_v28, %v2577_v59 }
 0x933   : > { %2428 = vmatmul.mubr.msk.bf16.vlgmr.msra.gmra.mrb[20].mxu0 %vm711_vm1, %v1504_v4  ;;  %v2589_v8 = vpop.eup %2588  ;;  %v1775_v14 = vsel %vm711_vm1, %v2587_v6, 0.0 }
 0x934   : > { %2431 = vmatprep.mubr.msk.bf16.mxu0 %vm711_vm1, %v1505_v5  ;;  %2448 = vmatpush3.bf16.msra.mxu0 %v1792_v61  ;;  %v2591_v12 = vpop.eup %2590  ;;  %v1497_v16 = vsel %vm711_vm1, %v2589_v8, 0.0 }
 0x935   : > { %1773 = vadd.xlane.f32.xlu0 %v1772_v18  ;;  %2449 = vmatprep.subr.bf16.mxu0 %v1794_v10  ;;  %v2593_v9 = vpop.eup %2592  ;;  %v1506_v13 = vpack.c.bf16 %v2591_v12, %v2589_v8  ;;  %v1500_v37 = vsel %vm711_vm1, %v2591_v12, 0.0 }
 0x936   : > { %v1781_v23 = vsel %vm711_vm1, %v2593_v9, 0.0 }
 0x938   : > { %2450 = vmatpush3.bf16.msra.mxu0 %v1794_v10 }
 0x939   : > { %v2595_v15 = vpop.eup %2594  ;;  %1776 = vadd.xlane.f32.xlu0 %v1775_v14 }
 0x93a   : > { %v1778_v20 = vsel %vm711_vm1, %v2595_v15, 0.0  ;;  %v2597_v22 = vpop.eup %2596  ;;  %v1789_v30 = vpack.c.bf16 %v2595_v15, %v2587_v6 }
 0x93b   : > { %1779 = vadd.xlane.f32.xlu1 %v1778_v20  ;;  %2432 = vmatmul.mubr.msk.bf16.gmra.mrb[24].mxu0 %vm711_vm1, %v1506_v13  ;;  %v1784_v24 = vsel %vm711_vm1, %v2597_v22, 0.0  ;;  %v1790_v17 = vpack.c.bf16 %v2597_v22, %v2593_v9 }
 0x93c   : > { %2451 = vmatprep.mubr.msk.bf16.mxu0 %vm711_vm1, %v1787_v21 }
 0x93d   : > { %1782 = vadd.xlane.f32.xlu0 %v1781_v23 }
 0x93f   : > { %1785 = vadd.xlane.f32.xlu1 %v1784_v24 }
 0x941   : > { %1480 = vadd.xlane.f32.xlu0 %v1479_v25 }
 0x943   : > { %1483 = vadd.xlane.f32.xlu1 %v1482_v29  ;;  %2452 = vmatmul.mubr.msk.bf16.vlgmr.msra.gmra.mrb[28].mxu0 %vm711_vm1, %v1788_v26 }
 0x944   : > { %2455 = vmatprep.mubr.msk.bf16.mxu0 %vm711_vm1, %v1789_v30 }
 0x945   : > { %1486 = vadd.xlane.f32.xlu0 %v1485_v31 }
 0x947   : > { %1489 = vadd.xlane.f32.xlu1 %v1488_v1 }
 0x949   : > { %1492 = vadd.xlane.f32.xlu0 %v1491_v34 }
 0x94b   : > { %1495 = vadd.xlane.f32.xlu1 %v1494_v35  ;;  %2456 = vmatmul.mubr.msk.bf16.gmra.mrb[32].mxu0 %vm711_vm1, %v1790_v17 }
 0x94d   : > { %1498 = vadd.xlane.f32.xlu0 %v1497_v16 }
 0x94f   : > { %1501 = vadd.xlane.f32.xlu1 %v1500_v37 }
 0x9b8   : > { %v1768_v41 = vpop.xlane.xlu1 %1767 }
 0x9ba   : > { %v1765_v39 = vpop.xlane.xlu0 %1764 }
 0x9be   : > { %v1771_v19 = vpop.xlane.xlu0 %1770 }
 0x9c2   : > { %v1774_v40 = vpop.xlane.xlu0 %1773 }
 0x9c6   : > { %v1777_v11 = vpop.xlane.xlu0 %1776 }
 0x9c8   : > { %v1780_v42 = vpop.xlane.xlu1 %1779 }
 0x9ca   : > { %v1783_v27 = vpop.xlane.xlu0 %1782 }
 0x9cc   : > { %v1786_v43 = vpop.xlane.xlu1 %1785 }
 0x9ce   : > { %v1481_v38 = vpop.xlane.xlu0 %1480 }
 0x9cf   : > { %2598 = vrcp.f32 %v1481_v38 }
 0x9d0   : > { %v1484_v45 = vpop.xlane.xlu1 %1483 }
 0x9d2   : > { %v1487_v36 = vpop.xlane.xlu0 %1486 }
 0x9d3   : > { %2600 = vrcp.f32 %v1487_v36 }
 0x9d4   : > { %v1490_v44 = vpop.xlane.xlu1 %1489 }
 0x9d5   : > { %2602 = vrcp.f32 %v1490_v44 }
 0x9d6   : > { %v1493_v46 = vpop.xlane.xlu0 %1492  ;;  %2604 = vrcp.f32 %v1484_v45 }
 0x9d7   : > { %2606 = vrcp.f32 %v1493_v46 }
 0x9d8   : > { %v1496_v47 = vpop.xlane.xlu1 %1495 }
 0x9d9   : > { %v2599_v52 = vpop.eup %2598 }
 0x9da   : > { %v1499_v48 = vpop.xlane.xlu0 %1498 }
 0x9db   : > { %2608 = vrcp.f32 %v1499_v48 }
 0x9dc   : > { %v1502_v51 = vpop.xlane.xlu1 %1501 }
 0x9dd   : > { %2610 = vrcp.f32 %v1502_v51  ;;  %v2601_v49 = vpop.eup %2600 }
 0x9de   : > { %2612 = vrcp.f32 %v1496_v47 }
 0x9df   : > { %v2603_v57 = vpop.eup %2602  ;;  %2614 = vrcp.f32 %v1768_v41 }
 0x9e0   : > { %v2605_v32 = vpop.eup %2604  ;;  %2616 = vrcp.f32 %v1771_v19 }
 0x9e1   : > { %v2607_v0 = vpop.eup %2606  ;;  %2618 = vrcp.f32 %v1774_v40 }
 0x9e2   : > { %2620 = vrcp.f32 %v1765_v39 }
 0x9e3   : > { %2622 = vrcp.f32 %v1777_v11 }
 0x9e4   : > { %2624 = vrcp.f32 %v1783_v27 }
 0x9e5   : > { %v2609_v3 = vpop.eup %2608  ;;  %2626 = vrcp.f32 %v1786_v43 }
 0x9e6   : > { %2628 = vrcp.f32 %v1780_v42 }
 0x9e7   : > { %v2611_v28 = vpop.eup %2610 }
 0x9e8   : > { %v2613_v5 = vpop.eup %2612 }
 0x9e9   : > { %v2615_v15 = vpop.eup %2614 }
 0x9ea   : > { %v2617_v20 = vpop.eup %2616 }
 0x9eb   : > { %v2619_v22 = vpop.eup %2618 }
 0x9ec   : > { %v2621_v24 = vpop.eup %2620 }
 0x9ed   : > { %v2623_v17 = vpop.eup %2622 }
 0x9ee   : > { %v2625_v16 = vpop.eup %2624 }
 0x9ef   : > { %v2627_v39 = vpop.eup %2626 }
 0x9f0   : > { %v2629_v40 = vpop.eup %2628 }
 0xa06   : > { %v2429_v55 = vpop.f32.mrb[20].mxu0 }
 0xa07   : > { %v1561_v50 = vpop.f32.mrb[21].mxu0  ;;  %v1602_v33 = vmul.f32 %v2601_v49, %v2429_v55 }
 0xa08   : > { %v2430_v58 = vpop.f32.mrb[22].mxu0  ;;  %v1600_v53 = vmul.f32 %v2599_v52, %v1561_v50 }
 0xa09   : > { %v1603_v56 = vmul.f32 %v2603_v57, %v2430_v58  ;;  %v1564_v59 = vpop.f32.mrb[23].mxu0 }
 0xa0a   : > { %v1601_v60 = vmul.f32 %v2605_v32, %v1564_v59 }
 0xa0b   : > { %v1609_v62 = vpack.c.bf16 %v1603_v56, %v1602_v33 }
 0xa0c   : > { %v1608_v61 = vpack.c.bf16 %v1601_v60, %v1600_v53 }
 0xa0d   : > { %1613 = vst.msk [vmem:[#allocation3 + $0x8] sm:$0xff] %vm927_vm6, %v1609_v62 }
 0xa0e   : > { %1612 = vst.msk [vmem:[#allocation3] sm:$0xff] %vm927_vm6, %v1608_v61  ;;  %v2433_v2 = vpop.f32.mrb[24].mxu0 }
 0xa0f   : > { %v1577_v63 = vpop.f32.mrb[25].mxu0  ;;  %v1606_v10 = vmul.f32 %v2609_v3, %v2433_v2 }
 0xa10   : > { %v2434_v4 = vpop.f32.mrb[26].mxu0  ;;  %v1604_v8 = vmul.f32 %v2607_v0, %v1577_v63 }
 0xa11   : > { %v1607_v18 = vmul.f32 %v2611_v28, %v2434_v4  ;;  %v1580_v6 = vpop.f32.mrb[27].mxu0 }
 0xa12   : > { %v1605_v12 = vmul.f32 %v2613_v5, %v1580_v6 }
 0xa13   : > { %v1611_v9 = vpack.c.bf16 %v1607_v18, %v1606_v10 }
 0xa14   : > { %v1610_v14 = vpack.c.bf16 %v1605_v12, %v1604_v8 }
 0xa15   : > { %1615 = vst.msk [vmem:[#allocation3 + $0x18] sm:$0xff] %vm927_vm6, %v1611_v9 }
 0xa16   : > { %1614 = vst.msk [vmem:[#allocation3 + $0x10] sm:$0xff] %vm927_vm6, %v1610_v14  ;;  %v2453_v13 = vpop.f32.mrb[28].mxu0 }
 0xa17   : > { %v1843_v21 = vpop.f32.mrb[29].mxu0  ;;  %v1884_v25 = vmul.f32 %v2617_v20, %v2453_v13 }
 0xa18   : > { %v2454_v23 = vpop.f32.mrb[30].mxu0  ;;  %v1882_v30 = vmul.f32 %v2621_v24, %v1843_v21 }
 0xa19   : > { %v1885_v26 = vmul.f32 %v2619_v22, %v2454_v23  ;;  %v1846_v29 = vpop.f32.mrb[31].mxu0 }
 0xa1a   : > { %v1883_v31 = vmul.f32 %v2615_v15, %v1846_v29 }
 0xa1b   : > { %v1891_v1 = vpack.c.bf16 %v1885_v26, %v1884_v25 }
 0xa1c   : > { %v1890_v34 = vpack.c.bf16 %v1883_v31, %v1882_v30 }
 0xa1d   : > { %1900 = vrot.lane.b32.xlu1 %v1891_v1, %s2718_s17 }
 0xa1e   : > { %v2457_v35 = vpop.f32.mrb[32].mxu0  ;;  %1898 = vrot.lane.b32.xlu0 %v1890_v34, %s2718_s17 }
 0xa1f   : > { %v1859_v37 = vpop.f32.mrb[33].mxu0  ;;  %v1888_v41 = vmul.f32 %v2625_v16, %v2457_v35 }
 0xa20   : > { %v2458_v19 = vpop.f32.mrb[34].mxu0  ;;  %v1886_v27 = vmul.f32 %v2623_v17, %v1859_v37 }
 0xa21   : > { %v1889_v11 = vmul.f32 %v2627_v39, %v2458_v19  ;;  %v1862_v42 = vpop.f32.mrb[35].mxu0 }
 0xa22   : > { %v1887_v43 = vmul.f32 %v2629_v40, %v1862_v42 }
 0xa23   : > { %v1893_v38 = vpack.c.bf16 %v1889_v11, %v1888_v41 }
 0xa24   : > { %v1892_v45 = vpack.c.bf16 %v1887_v43, %v1886_v27 }
 0xa26   : > { %1902 = vrot.lane.b32.xlu1 %v1892_v45, %s2718_s17 }
 0xa2a   : > { %1904 = vrot.lane.b32.xlu1 %v1893_v38, %s2718_s17  ;;  %s3245_s17 = scalar_lea.hbm %s3317_s14, %s2240_s15 }
 0xa8f   : > { %v1901_v36 = vpop.permute.xlu1 %1900 }
 0xa90   : > { %1912 = vst.msk [vmem:[#allocation3 + $0x8] sm:$0xff] %vm1910_vm13, %v1901_v36  ;;  %v1899_v44 = vpop.permute.xlu0 %1898 }
 0xa91   : > { %1911 = vst.msk [vmem:[#allocation3] sm:$0xff] %vm1910_vm13, %v1899_v44 }
 0xa97   : > { %v1916_v48 = vld [vmem:[#allocation3 + $0x8] sm:$0xff] }
 0xa98   : > { %v1903_v46 = vpop.permute.xlu1 %1902  ;;  %v1915_v47 = vld [vmem:[#allocation3] sm:$0xff] }
 0xa99   : > { %1913 = vst.msk [vmem:[#allocation3 + $0x10] sm:$0xff] %vm1910_vm13, %v1903_v46  ;;  %2463 = vmatprep.mubr.msk.bf16.mxu1 %vm711_vm1, %v1915_v47 }
 0xa9a   : > { %2464 = vmatmul.mubr.msk.bf16.vlgmr.msra.gmra.mrb[40].mxu1 %vm711_vm1, %v1916_v48 }
 0xa9c   : > { %v1905_v51 = vpop.permute.xlu1 %1904 }
 0xa9d   : > { %1914 = vst.msk [vmem:[#allocation3 + $0x18] sm:$0xff] %vm1910_vm13, %v1905_v51 }
 0xaa0   : > { %v1917_v52 = vld [vmem:[#allocation3 + $0x10] sm:$0xff] }
 0xaa1   : > { %2467 = vmatprep.mubr.msk.bf16.mxu1 %vm711_vm1, %v1917_v52 }
 0xaa4   : > { %v1918_v55 = vld [vmem:[#allocation3 + $0x18] sm:$0xff] }
 0xaa5   : > { %2468 = vmatmul.mubr.msk.bf16.gmra.mrb[44].mxu1 %vm711_vm1, %v1918_v55 }
 0xaa6   : > { %2643 = shalt.err (!%p2640_p5)
}
 0xaa7   : > { %s2644_s16 = scalar_lea.hbm %s3245_s17, 16  ;;  %s2648_s24 = scalar_lea.hbm %s3317_s14, 32 }
 0xaa8   : > { %p2645_p6 = scmp.ne.s32.totalorder %s3245_s17, %s2644_s16  ;;  %p2649_p10 = scmp.lt.u32.totalorder %s3245_s17, %s3317_s14 }
 0xaa9   : > { %p2650_p11 = scmp.lt.u32.totalorder %s2648_s24, %s2644_s16  ;;  %p2652_p13 = scmp.lt.u32.totalorder %s2644_s16, %s3245_s17 }
 0xaaa   : > { %p2646_p7 = pnand %p2645_p6, %p2835_p4 }
 0xaab   : > { %p2651_p12 = por %p2650_p11, %p2649_p10 }
 0xaac   : > { %p2647_p9 = pneg %p2646_p7 }
 0xaad   : > { %p2653_p0 = por %p2652_p13, %p2651_p12 }
 0xaaf   : > { %p2654_p1 = pnand %p2653_p0, %p2647_p9 }
 0xab1   : > { %2657 = shalt.err (!%p2654_p1)
}
 0xab2   : > { %2475 = dma.vmem_to_hbm [thread:$0]  (%p2835_p4), %s2049_s20, 16, %s3245_s17, %s2032_s26   ;;  %v1923_v49 = vrot.slane %v3093_v7, %v2954_v54 }
 0xab3   : > { %s3334_s1 = sshll.u32 %s2865_s22, 6 }
 0xab4   : > { %s549_s28 = scalar_lea.vmem %s3316_s13, %s3334_s1 }
 0xb6d   : > { %v2465_v50 = vpop.f32.mrb[40].mxu1 }
 0xb6e   : > { %v1992_v57 = vadd.f32 %v2465_v50, %v1923_v49  ;;  %v1983_v58 = vpop.f32.mrb[41].mxu1 }
 0xb6f   : > { %v1984_v32 = vadd.f32 %v1983_v58, %v1923_v49  ;;  %v2466_v33 = vpop.f32.mrb[42].mxu1 }
 0xb70   : > { %2016 = vst.msk [vmem:[%s549_s28 + $0x10] sm:$0xff] %vm711_vm1, %v1992_v57  ;;  %v1995_v56 = vadd.f32 %v2466_v33, %v1923_v49  ;;  %v1986_v59 = vpop.f32.mrb[43].mxu1 }
 0xb71   : > { %2014 = vst.msk [vmem:[%s549_s28] sm:$0xff] %vm711_vm1, %v1984_v32  ;;  %v1987_v53 = vadd.f32 %v1986_v59, %v1923_v49 }
 0xb72   : > { %2017 = vst.msk [vmem:[%s549_s28 + $0x18] sm:$0xff] %vm711_vm1, %v1995_v56 }
 0xb73   : > { %2015 = vst.msk [vmem:[%s549_s28 + $0x8] sm:$0xff] %vm711_vm1, %v1987_v53 }
 0xb78   : > { %v2469_v54 = vpop.f32.mrb[44].mxu1 }
 0xb79   : > { %v2008_v7 = vadd.f32 %v2469_v54, %v1923_v49  ;;  %v1999_v60 = vpop.f32.mrb[45].mxu1 }
 0xb7a   : > { %v2000_v62 = vadd.f32 %v1999_v60, %v1923_v49  ;;  %v2470_v61 = vpop.f32.mrb[46].mxu1 }
 0xb7b   : > { %2020 = vst.msk [vmem:[%s549_s28 + $0x30] sm:$0xff] %vm711_vm1, %v2008_v7  ;;  %v2011_v0 = vadd.f32 %v2470_v61, %v1923_v49  ;;  %v2002_v2 = vpop.f32.mrb[47].mxu1 }
 0xb7c   : > { %2018 = vst.msk [vmem:[%s549_s28 + $0x20] sm:$0xff] %vm711_vm1, %v2000_v62  ;;  %v2003_v3 = vadd.f32 %v2002_v2, %v1923_v49 }
 0xb7d   : > { %2021 = vst.msk [vmem:[%s549_s28 + $0x38] sm:$0xff] %vm711_vm1, %v2011_v0 }
 0xb7e   : > { %2019 = vst.msk [vmem:[%s549_s28 + $0x28] sm:$0xff] %vm711_vm1, %v2003_v3 }
 0xb7f PF: > { %p2481_p4 = scmp.ge.s32.totalorder %s2708_s18, 2  ;;  %s2072_s22 = sand.u32 1, %s2688_s29  }
 0xb80   : > { %s2073_s20 = scalar_lea.sflag [#allocation6], %s2072_s22 }
 0xb81   : > { %p2478_p2 = pnand %p2481_p4, %p2842_p8 }
 0xb83   : > { %2683 = dma.done.wait (!%p2478_p2), %s2073_s20, 16  }
 0xb84   : > { %2685 = vsyncadd (!%p2478_p2), %s2073_s20, 4294967280  ;;  %s28_s18 = sadd.s32 1, %s2708_s18   ;;  %s3336_s17 = sld [smem:[#allocation8_spill]] }
 0xb85   : > { %p25_p3 = scmp.ge.s32.totalorder %s28_s18, 4   ;;  %s3337_s15 = sld [smem:[#allocation12_spill]] }
 0xb86   : > { %s3338_s16 = sld [smem:[#allocation9_spill]]  ;;  %s3339_s26 = sld [smem:[#allocation10_spill]] }
 0xb87   : > { %s3340_s29 = smov %s2692_s30  ;;  %27 = sbr.rel (!%p25_p3) target bundleno = 7 (0x7), region = 129 }
 0xb8a   : > { %s3341_s30 = smov %s3336_s17 }
 0xb8c   : > { %s3342_s17 = smov %s3339_s26 }
 0xb8e   :  { %2077 = vsyncpa [#allocation6], 1 }
 0xb8f   :  { %2079 = vsyncpa [#allocation6 + $0x1], 1 }

</bundles_post_ra>
